<compile_context>
chip_gen: v7x
topology: tpu7x:2x2x1
jax: 0.10.0
libtpu: 0.0.40
codegen_flags: <defaults>
</compile_context>

<pallas_src>
import numpy as np
import jax
import jax.numpy as jnp
from jax import lax
from jax.experimental import pallas as pl
from jax.experimental.pallas import tpu as pltpu


def rnn_kernel(x_ref, len_ref,
               wih0t_ref, b0_ref,
               w0s_ref, whh1t_ref, b1_ref,
               wfct_ref, bfc_ref,
               logits_ref, hidden_ref,
               xw0_scr):
    TB = x_ref.shape[0]
    B = len_ref.shape[0]
    H = whh1t_ref.shape[0]
    V = wfct_ref.shape[1]
    T = TB // B

    # Hoisted layer-0 input projection for ALL steps: one (T*B, E)bf16 @ (E, H)bf16
    # MXU matmul, f32 accumulation + f32 bias, staged in VMEM scratch.
    xw0_scr[...] = jnp.dot(x_ref[...], wih0t_ref[...],
                           preferred_element_type=jnp.float32) + b0_ref[...]

    # Loop-invariant loads & broadcasts hoisted once (JAX does not CSE broadcast_in_dim).
    len_bh = jnp.broadcast_to(len_ref[...], (B, H))          # (B, H) int32
    b1_b = jnp.broadcast_to(b1_ref[...], (B, H))             # (B, H) f32
    bfc_b = jnp.broadcast_to(bfc_ref[...], (B, V))           # (B, V) f32
    w0s = w0s_ref[...]                                       # (H, 2H) bf16 = [whh0^T | wih1^T]
    whh1t = whh1t_ref[...]                                   # (H, H)  bf16
    wfct = wfct_ref[...]                                     # (H, V)  bf16

    zeros_h = jnp.zeros((B, H), jnp.float32)

    def step(t, carry):
        h0, h1, pre, rec = carry                             # pre = h0 @ w0s ; rec = h1 @ whh1^T
        mask = len_bh > t                                    # (B, H) valid-step mask
        row = pl.multiple_of(t * B, B)                       # sublane-aligned (B % 8 == 0)

        # Layer 0: tanh + where + the single fused dot below are the serial chain.
        h0 = jnp.where(mask, jnp.tanh(xw0_scr[pl.ds(row, B), :] + pre[:, :H]), h0)

        # The ONE dependent MXU dot per step (bf16 in, f32 acc):
        #   pre[:, :H] feeds step t+1's layer-0 recurrence, pre[:, H:] feeds layer 1 now.
        pre = jnp.dot(h0.astype(jnp.bfloat16), w0s, preferred_element_type=jnp.float32)

        # Layer 1: its recurrent dot and the fc dot are off the h0 critical path.
        h1 = jnp.where(mask, jnp.tanh(pre[:, H:] + rec + b1_b), h1)
        rec = jnp.dot(h1.astype(jnp.bfloat16), whh1t, preferred_element_type=jnp.float32)

        # pad_packed_sequence zero-pads past each sequence end; interleaved fc writes
        # the final, lane-dense (B, V) logits rows for this step (fills MXU slack).
        mh1 = jnp.where(mask, h1, 0.0)
        logits_ref[pl.ds(row, B), :] = (
            jnp.dot(mh1.astype(jnp.bfloat16), wfct, preferred_element_type=jnp.float32)
            + bfc_b)
        return h0, h1, pre, rec

    h0, h1, _, _ = lax.fori_loop(
        0, T, step,
        (zeros_h, zeros_h, jnp.zeros((B, 2 * H), jnp.float32), zeros_h),
        unroll=True)

    hidden_ref[0] = h0
    hidden_ref[1] = h1


def prepare_pallas_params(params):
    """One-time weight packing: transposes, bias fusion, N-stacking, bf16 casts."""
    H = params["whh0"].shape[0]
    V = params["embedding"].shape[0]
    bf16 = jnp.bfloat16
    return {
        "emb_bf16": params["embedding"].astype(bf16),                              # (V, E)
        "wih0_t": params["wih0"].T.astype(bf16),                                   # (E, H)
        "b0": (params["bih0"] + params["bhh0"]).reshape(1, H).astype(jnp.float32),  # (1, H)
        # Stacked along N: h0 @ [whh0^T | wih1^T]  -> one dependent dot per step.
        "w0s": jnp.concatenate([params["whh0"].T, params["wih1"].T], 1).astype(bf16),  # (H, 2H)
        "whh1_t": params["whh1"].T.astype(bf16),                                   # (H, H)
        "b1": (params["bih1"] + params["bhh1"]).reshape(1, H).astype(jnp.float32),  # (1, H)
        "wfc_t": params["wfc"].T.astype(bf16),                                     # (H, V)
        "bfc": params["bfc"].reshape(1, V).astype(jnp.float32),                    # (1, V)
    }


def rnn_model_forward(input_seq, lengths, params, prepared=None):
    """input_seq: (B, T) int32 token ids; lengths: (B,) int32.
    Returns (output (B, T, V) float32, hidden_state (num_layers, B, H) float32)."""
    if prepared is None:
        prepared = prepare_pallas_params(params)

    B, T = input_seq.shape
    V, E = params["embedding"].shape
    H = params["whh0"].shape[0]
    L = 2

    # Pad batch to a full f32 sublane group (multiple of 8); padded rows get length 0
    # so they stay at the zero initial state and are sliced away at the end.
    B_pad = max(8, ((B + 7) // 8) * 8)
    input_p = jnp.zeros((B_pad, T), jnp.int32).at[:B].set(input_seq.astype(jnp.int32))
    lengths_p = jnp.zeros((B_pad,), jnp.int32).at[:B].set(lengths.astype(jnp.int32))

    # Glue: time-major embedding gather straight from the bf16 table (no separate
    # (B,T,E)->(T,B,E) transpose copy); dropout (eval) = identity.
    x = prepared["emb_bf16"][input_p.T].reshape(T * B_pad, E)        # (T*B_pad, E) bf16
    lengths_2d = lengths_p.reshape(B_pad, 1)

    vmem = pl.BlockSpec(memory_space=pltpu.MemorySpace.VMEM)

    logits_flat, hidden_p = pl.pallas_call(
        rnn_kernel,
        out_shape=(
            jax.ShapeDtypeStruct((T * B_pad, V), jnp.float32),
            jax.ShapeDtypeStruct((L, B_pad, H), jnp.float32),
        ),
        in_specs=[vmem] * 9,
        out_specs=(vmem, vmem),
        scratch_shapes=[
            pltpu.VMEM((T * B_pad, H), jnp.float32),   # hoisted x @ W_ih0^T + b0 (only scratch)
        ],
        compiler_params=pltpu.CompilerParams(vmem_limit_bytes=32 * 1024 * 1024),
    )(
        x, lengths_2d,
        prepared["wih0_t"], prepared["b0"],
        prepared["w0s"], prepared["whh1_t"], prepared["b1"],
        prepared["wfc_t"], prepared["bfc"],
    )

    output = jnp.transpose(logits_flat.reshape(T, B_pad, V), (1, 0, 2))[:B]   # (B, T, V)
    hidden = hidden_p[:, :B, :]                                               # (L, B, H)
    return output, hidden


def reference_forward(input_seq, lengths, params, mxu_bf16=False):
    """Pure-JAX reference replicating the PyTorch semantics (eval mode).
    With mxu_bf16=True, matmul operands are rounded to bf16 (matches the kernel's
    bf16-MXU / f32-accumulate arithmetic)."""
    def md(a, b):
        if mxu_bf16:
            a = a.astype(jnp.bfloat16)
            b = b.astype(jnp.bfloat16)
        return jnp.dot(a, b, preferred_element_type=jnp.float32)

    emb = params["embedding"][input_seq]             # (B, T, E) f32
    B, T, E = emb.shape
    H = params["whh0"].shape[0]
    b0 = params["bih0"] + params["bhh0"]
    b1 = params["bih1"] + params["bhh1"]
    h0 = jnp.zeros((B, H), jnp.float32)
    h1 = jnp.zeros((B, H), jnp.float32)
    outs = []
    for t in range(T):
        m = (lengths > t)[:, None]
        n0 = jnp.tanh(md(emb[:, t], params["wih0"].T) + b0 + md(h0, params["whh0"].T))
        h0 = jnp.where(m, n0, h0)
        n1 = jnp.tanh(md(h0, params["wih1"].T) + md(h1, params["whh1"].T) + b1)
        h1 = jnp.where(m, n1, h1)
        outs.append(jnp.where(m, h1, 0.0))
    rnn_out = jnp.stack(outs, axis=1)                        # (B, T, H)
    out = md(rnn_out.reshape(B * T, H), params["wfc"].T).reshape(B, T, -1) + params["bfc"]
    return out, jnp.stack([h0, h1], axis=0)


def make_params(key, vocab_size, embedding_dim, hidden_dim):
    ks = jax.random.split(key, 12)
    s = 0.1
    return {
        "embedding": jax.random.normal(ks[0], (vocab_size, embedding_dim), jnp.float32) * s,
        "wih0": jax.random.normal(ks[1], (hidden_dim, embedding_dim), jnp.float32) * s,
        "whh0": jax.random.normal(ks[2], (hidden_dim, hidden_dim), jnp.float32) * s,
        "bih0": jax.random.normal(ks[3], (hidden_dim,), jnp.float32) * s,
        "bhh0": jax.random.normal(ks[4], (hidden_dim,), jnp.float32) * s,
        "wih1": jax.random.normal(ks[5], (hidden_dim, hidden_dim), jnp.float32) * s,
        "whh1": jax.random.normal(ks[6], (hidden_dim, hidden_dim), jnp.float32) * s,
        "bih1": jax.random.normal(ks[7], (hidden_dim,), jnp.float32) * s,
        "bhh1": jax.random.normal(ks[8], (hidden_dim,), jnp.float32) * s,
        "wfc": jax.random.normal(ks[9], (vocab_size, hidden_dim), jnp.float32) * s,
        "bfc": jax.random.normal(ks[10], (vocab_size,), jnp.float32) * s,
    }


if __name__ == "__main__":
    vocab_size, embedding_dim, hidden_dim = 256, 64, 128
    B, T = 4, 8

    key = jax.random.PRNGKey(0)
    kp, ktok = jax.random.split(key)
    params = make_params(kp, vocab_size, embedding_dim, hidden_dim)
    prepared = prepare_pallas_params(params)     # one-time weight packing

    input_seq = jax.random.randint(ktok, (B, T), 0, vocab_size, dtype=jnp.int32)
    # max(lengths) == T so padded output length matches T (as pad_packed_sequence would give).
    lengths = jnp.array([8, 5, 8, 3], dtype=jnp.int32)

    out, hidden = rnn_model_forward(input_seq, lengths, params, prepared)
    out = jax.block_until_ready(out)
    hidden = jax.block_until_ready(hidden)

    # 1) Tight check vs a reference that uses the same bf16-MXU / f32-accumulate arithmetic.
    m_out, m_hidden = reference_forward(input_seq, lengths, params, mxu_bf16=True)
    np.testing.assert_allclose(np.asarray(out), np.asarray(m_out), atol=1e-3, rtol=1e-3)
    np.testing.assert_allclose(np.asarray(hidden), np.asarray(m_hidden), atol=1e-3, rtol=1e-3)

    # 2) Looser check vs the full-f32 PyTorch-semantics reference (bf16-MXU precision budget).
    f_out, f_hidden = reference_forward(input_seq, lengths, params, mxu_bf16=False)
    np.testing.assert_allclose(np.asarray(out), np.asarray(f_out), atol=5e-2, rtol=5e-2)
    np.testing.assert_allclose(np.asarray(hidden), np.asarray(f_hidden), atol=5e-2, rtol=5e-2)

    assert out.shape == (B, T, vocab_size)
    assert hidden.shape == (2, B, hidden_dim)
    print("KERNEL_OK")
</pallas_src>

<mosaic_0001>
module attributes {stable_mosaic.version = 11 : i64} {
  func.func @rnn_kernel(%arg0: memref<64x64xbf16, #tpu.memory_space<vmem>>, %arg1: memref<8x1xi32, #tpu.memory_space<vmem>>, %arg2: memref<64x128xbf16, #tpu.memory_space<vmem>>, %arg3: memref<1x128xf32, #tpu.memory_space<vmem>>, %arg4: memref<128x256xbf16, #tpu.memory_space<vmem>>, %arg5: memref<128x128xbf16, #tpu.memory_space<vmem>>, %arg6: memref<1x128xf32, #tpu.memory_space<vmem>>, %arg7: memref<128x256xbf16, #tpu.memory_space<vmem>>, %arg8: memref<1x256xf32, #tpu.memory_space<vmem>>, %arg9: memref<64x256xf32, #tpu.memory_space<vmem>>, %arg10: memref<2x8x128xf32, #tpu.memory_space<vmem>>, %arg11: memref<64x128xf32, #tpu.memory_space<vmem>>) attributes {dimension_semantics = [], scalar_prefetch = 0 : i64, scratch_operands = 1 : i64, tpu.core_type = #tpu.core_type<tc>} {
    %c0 = arith.constant 0 : index
    %c0_0 = arith.constant 0 : index
    %0 = vector.load %arg0[%c0, %c0_0] : memref<64x64xbf16, #tpu.memory_space<vmem>>, vector<64x64xbf16>
    %c0_1 = arith.constant 0 : index
    %c0_2 = arith.constant 0 : index
    %1 = vector.load %arg2[%c0_1, %c0_2] : memref<64x128xbf16, #tpu.memory_space<vmem>>, vector<64x128xbf16>
    %cst = arith.constant dense<0.000000e+00> : vector<64x128xf32>
    %2 = tpu.matmul %0, %1, %cst {dimension_numbers = #tpu.dot_dimension_numbers<[1], [0], [0], [1], [0, 0, 1, 1], [], []>} : vector<64x64xbf16>, vector<64x128xbf16>, vector<64x128xf32> -> vector<64x128xf32>
    %c0_3 = arith.constant 0 : index
    %c0_4 = arith.constant 0 : index
    %3 = vector.load %arg3[%c0_3, %c0_4] : memref<1x128xf32, #tpu.memory_space<vmem>>, vector<1x128xf32>
    %4 = vector.broadcast %3 : vector<1x128xf32> to vector<64x128xf32>
    %5 = arith.addf %2, %4 : vector<64x128xf32>
    %c0_5 = arith.constant 0 : index
    %c0_6 = arith.constant 0 : index
    %6 = vector.load %arg11[%c0_5, %c0_6] : memref<64x128xf32, #tpu.memory_space<vmem>>, vector<64x128xf32>
    tpu.vector_store %arg11[%c0_5, %c0_6], %5 {strides = array<i32>} : memref<64x128xf32, #tpu.memory_space<vmem>>, vector<64x128xf32>,
    %c0_7 = arith.constant 0 : index
    %c0_8 = arith.constant 0 : index
    %7 = vector.load %arg1[%c0_7, %c0_8] : memref<8x1xi32, #tpu.memory_space<vmem>>, vector<8x1xi32>
    %8 = vector.shape_cast %7 : vector<8x1xi32> to vector<8x1xi32>
    %9 = vector.broadcast %8 : vector<8x1xi32> to vector<8x128xi32>
    %c0_9 = arith.constant 0 : index
    %c0_10 = arith.constant 0 : index
    %10 = vector.load %arg6[%c0_9, %c0_10] : memref<1x128xf32, #tpu.memory_space<vmem>>, vector<1x128xf32>
    %11 = vector.shape_cast %10 : vector<1x128xf32> to vector<1x128xf32>
    %12 = vector.broadcast %11 : vector<1x128xf32> to vector<8x128xf32>
    %c0_11 = arith.constant 0 : index
    %c0_12 = arith.constant 0 : index
    %13 = vector.load %arg8[%c0_11, %c0_12] : memref<1x256xf32, #tpu.memory_space<vmem>>, vector<1x256xf32>
    %14 = vector.shape_cast %13 : vector<1x256xf32> to vector<1x256xf32>
    %15 = vector.broadcast %14 : vector<1x256xf32> to vector<8x256xf32>
    %c0_13 = arith.constant 0 : index
    %c0_14 = arith.constant 0 : index
    %16 = vector.load %arg4[%c0_13, %c0_14] : memref<128x256xbf16, #tpu.memory_space<vmem>>, vector<128x256xbf16>
    %c0_15 = arith.constant 0 : index
    %c0_16 = arith.constant 0 : index
    %17 = vector.load %arg5[%c0_15, %c0_16] : memref<128x128xbf16, #tpu.memory_space<vmem>>, vector<128x128xbf16>
    %c0_17 = arith.constant 0 : index
    %c0_18 = arith.constant 0 : index
    %18 = vector.load %arg7[%c0_17, %c0_18] : memref<128x256xbf16, #tpu.memory_space<vmem>>, vector<128x256xbf16>
    %cst_19 = arith.constant 0.000000e+00 : f32
    %19 = vector.broadcast %cst_19 : f32 to vector<8x128xf32>
    %cst_20 = arith.constant 0.000000e+00 : f32
    %20 = vector.broadcast %cst_20 : f32 to vector<8x256xf32>
    %c0_i32 = arith.constant 0 : i32
    %21 = vector.broadcast %c0_i32 : i32 to vector<8x128xi32>
    %22 = arith.cmpi sgt, %9, %21 : vector<8x128xi32>
    %c8_i32 = arith.constant 8 : i32
    %23 = arith.muli %c0_i32, %c8_i32 : i32
    %24 = tpu.assume_multiple %23, 8 : i32
    %25 = arith.index_cast %24 : i32 to index
    %c0_21 = arith.constant 0 : index
    %26 = vector.load %arg11[%25, %c0_21] : memref<64x128xf32, #tpu.memory_space<vmem>>, vector<8x128xf32>
    %27 = vector.extract_strided_slice %20 {offsets = [0, 0], sizes = [8, 128], strides = [1, 1]} : vector<8x256xf32> to vector<8x128xf32>
    %28 = arith.addf %26, %27 : vector<8x128xf32>
    %29 = math.tanh %28 : vector<8x128xf32>
    %30 = arith.select %22, %29, %19 : vector<8x128xi1>, vector<8x128xf32>
    %31 = arith.truncf %30 : vector<8x128xf32> to vector<8x128xbf16>
    %cst_22 = arith.constant dense<0.000000e+00> : vector<8x256xf32>
    %32 = tpu.matmul %31, %16, %cst_22 {dimension_numbers = #tpu.dot_dimension_numbers<[1], [0], [0], [1], [0, 0, 1, 1], [], []>} : vector<8x128xbf16>, vector<128x256xbf16>, vector<8x256xf32> -> vector<8x256xf32>
    %33 = vector.extract_strided_slice %32 {offsets = [0, 128], sizes = [8, 128], strides = [1, 1]} : vector<8x256xf32> to vector<8x128xf32>
    %34 = arith.addf %33, %19 : vector<8x128xf32>
    %35 = arith.addf %34, %12 : vector<8x128xf32>
    %36 = math.tanh %35 : vector<8x128xf32>
    %37 = arith.select %22, %36, %19 : vector<8x128xi1>, vector<8x128xf32>
    %38 = arith.truncf %37 : vector<8x128xf32> to vector<8x128xbf16>
    %cst_23 = arith.constant dense<0.000000e+00> : vector<8x128xf32>
    %39 = tpu.matmul %38, %17, %cst_23 {dimension_numbers = #tpu.dot_dimension_numbers<[1], [0], [0], [1], [0, 0, 1, 1], [], []>} : vector<8x128xbf16>, vector<128x128xbf16>, vector<8x128xf32> -> vector<8x128xf32>
    %cst_24 = arith.constant 0.000000e+00 : f32
    %40 = vector.broadcast %cst_24 : f32 to vector<8x128xf32>
    %41 = arith.select %22, %37, %40 : vector<8x128xi1>, vector<8x128xf32>
    %42 = arith.truncf %41 : vector<8x128xf32> to vector<8x128xbf16>
    %cst_25 = arith.constant dense<0.000000e+00> : vector<8x256xf32>
    %43 = tpu.matmul %42, %18, %cst_25 {dimension_numbers = #tpu.dot_dimension_numbers<[1], [0], [0], [1], [0, 0, 1, 1], [], []>} : vector<8x128xbf16>, vector<128x256xbf16>, vector<8x256xf32> -> vector<8x256xf32>
    %44 = arith.addf %43, %15 : vector<8x256xf32>
    %45 = arith.index_cast %24 : i32 to index
    %c0_26 = arith.constant 0 : index
    %46 = vector.load %arg9[%45, %c0_26] : memref<64x256xf32, #tpu.memory_space<vmem>>, vector<8x256xf32>
    tpu.vector_store %arg9[%45, %c0_26], %44 {strides = array<i32>} : memref<64x256xf32, #tpu.memory_space<vmem>>, vector<8x256xf32>,
    %c1_i32 = arith.constant 1 : i32
    %47 = vector.broadcast %c1_i32 : i32 to vector<8x128xi32>
    %48 = arith.cmpi sgt, %9, %47 : vector<8x128xi32>
    %c8_i32_27 = arith.constant 8 : i32
    %49 = arith.muli %c1_i32, %c8_i32_27 : i32
    %50 = tpu.assume_multiple %49, 8 : i32
    %51 = arith.index_cast %50 : i32 to index
    %c0_28 = arith.constant 0 : index
    %52 = vector.load %arg11[%51, %c0_28] : memref<64x128xf32, #tpu.memory_space<vmem>>, vector<8x128xf32>
    %53 = vector.extract_strided_slice %32 {offsets = [0, 0], sizes = [8, 128], strides = [1, 1]} : vector<8x256xf32> to vector<8x128xf32>
    %54 = arith.addf %52, %53 : vector<8x128xf32>
    %55 = math.tanh %54 : vector<8x128xf32>
    %56 = arith.select %48, %55, %30 : vector<8x128xi1>, vector<8x128xf32>
    %57 = arith.truncf %56 : vector<8x128xf32> to vector<8x128xbf16>
    %cst_29 = arith.constant dense<0.000000e+00> : vector<8x256xf32>
    %58 = tpu.matmul %57, %16, %cst_29 {dimension_numbers = #tpu.dot_dimension_numbers<[1], [0], [0], [1], [0, 0, 1, 1], [], []>} : vector<8x128xbf16>, vector<128x256xbf16>, vector<8x256xf32> -> vector<8x256xf32>
    %59 = vector.extract_strided_slice %58 {offsets = [0, 128], sizes = [8, 128], strides = [1, 1]} : vector<8x256xf32> to vector<8x128xf32>
    %60 = arith.addf %59, %39 : vector<8x128xf32>
    %61 = arith.addf %60, %12 : vector<8x128xf32>
    %62 = math.tanh %61 : vector<8x128xf32>
    %63 = arith.select %48, %62, %37 : vector<8x128xi1>, vector<8x128xf32>
    %64 = arith.truncf %63 : vector<8x128xf32> to vector<8x128xbf16>
    %cst_30 = arith.constant dense<0.000000e+00> : vector<8x128xf32>
    %65 = tpu.matmul %64, %17, %cst_30 {dimension_numbers = #tpu.dot_dimension_numbers<[1], [0], [0], [1], [0, 0, 1, 1], [], []>} : vector<8x128xbf16>, vector<128x128xbf16>, vector<8x128xf32> -> vector<8x128xf32>
    %cst_31 = arith.constant 0.000000e+00 : f32
    %66 = vector.broadcast %cst_31 : f32 to vector<8x128xf32>
    %67 = arith.select %48, %63, %66 : vector<8x128xi1>, vector<8x128xf32>
    %68 = arith.truncf %67 : vector<8x128xf32> to vector<8x128xbf16>
    %cst_32 = arith.constant dense<0.000000e+00> : vector<8x256xf32>
    %69 = tpu.matmul %68, %18, %cst_32 {dimension_numbers = #tpu.dot_dimension_numbers<[1], [0], [0], [1], [0, 0, 1, 1], [], []>} : vector<8x128xbf16>, vector<128x256xbf16>, vector<8x256xf32> -> vector<8x256xf32>
    %70 = arith.addf %69, %15 : vector<8x256xf32>
    %71 = arith.index_cast %50 : i32 to index
    %c0_33 = arith.constant 0 : index
    %72 = vector.load %arg9[%71, %c0_33] : memref<64x256xf32, #tpu.memory_space<vmem>>, vector<8x256xf32>
    tpu.vector_store %arg9[%71, %c0_33], %70 {strides = array<i32>} : memref<64x256xf32, #tpu.memory_space<vmem>>, vector<8x256xf32>,
    %c2_i32 = arith.constant 2 : i32
    %73 = vector.broadcast %c2_i32 : i32 to vector<8x128xi32>
    %74 = arith.cmpi sgt, %9, %73 : vector<8x128xi32>
    %c8_i32_34 = arith.constant 8 : i32
    %75 = arith.muli %c2_i32, %c8_i32_34 : i32
    %76 = tpu.assume_multiple %75, 8 : i32
    %77 = arith.index_cast %76 : i32 to index
    %c0_35 = arith.constant 0 : index
    %78 = vector.load %arg11[%77, %c0_35] : memref<64x128xf32, #tpu.memory_space<vmem>>, vector<8x128xf32>
    %79 = vector.extract_strided_slice %58 {offsets = [0, 0], sizes = [8, 128], strides = [1, 1]} : vector<8x256xf32> to vector<8x128xf32>
    %80 = arith.addf %78, %79 : vector<8x128xf32>
    %81 = math.tanh %80 : vector<8x128xf32>
    %82 = arith.select %74, %81, %56 : vector<8x128xi1>, vector<8x128xf32>
    %83 = arith.truncf %82 : vector<8x128xf32> to vector<8x128xbf16>
    %cst_36 = arith.constant dense<0.000000e+00> : vector<8x256xf32>
    %84 = tpu.matmul %83, %16, %cst_36 {dimension_numbers = #tpu.dot_dimension_numbers<[1], [0], [0], [1], [0, 0, 1, 1], [], []>} : vector<8x128xbf16>, vector<128x256xbf16>, vector<8x256xf32> -> vector<8x256xf32>
    %85 = vector.extract_strided_slice %84 {offsets = [0, 128], sizes = [8, 128], strides = [1, 1]} : vector<8x256xf32> to vector<8x128xf32>
    %86 = arith.addf %85, %65 : vector<8x128xf32>
    %87 = arith.addf %86, %12 : vector<8x128xf32>
    %88 = math.tanh %87 : vector<8x128xf32>
    %89 = arith.select %74, %88, %63 : vector<8x128xi1>, vector<8x128xf32>
    %90 = arith.truncf %89 : vector<8x128xf32> to vector<8x128xbf16>
    %cst_37 = arith.constant dense<0.000000e+00> : vector<8x128xf32>
    %91 = tpu.matmul %90, %17, %cst_37 {dimension_numbers = #tpu.dot_dimension_numbers<[1], [0], [0], [1], [0, 0, 1, 1], [], []>} : vector<8x128xbf16>, vector<128x128xbf16>, vector<8x128xf32> -> vector<8x128xf32>
    %cst_38 = arith.constant 0.000000e+00 : f32
    %92 = vector.broadcast %cst_38 : f32 to vector<8x128xf32>
    %93 = arith.select %74, %89, %92 : vector<8x128xi1>, vector<8x128xf32>
    %94 = arith.truncf %93 : vector<8x128xf32> to vector<8x128xbf16>
    %cst_39 = arith.constant dense<0.000000e+00> : vector<8x256xf32>
    %95 = tpu.matmul %94, %18, %cst_39 {dimension_numbers = #tpu.dot_dimension_numbers<[1], [0], [0], [1], [0, 0, 1, 1], [], []>} : vector<8x128xbf16>, vector<128x256xbf16>, vector<8x256xf32> -> vector<8x256xf32>
    %96 = arith.addf %95, %15 : vector<8x256xf32>
    %97 = arith.index_cast %76 : i32 to index
    %c0_40 = arith.constant 0 : index
    %98 = vector.load %arg9[%97, %c0_40] : memref<64x256xf32, #tpu.memory_space<vmem>>, vector<8x256xf32>
    tpu.vector_store %arg9[%97, %c0_40], %96 {strides = array<i32>} : memref<64x256xf32, #tpu.memory_space<vmem>>, vector<8x256xf32>,
    %c3_i32 = arith.constant 3 : i32
    %99 = vector.broadcast %c3_i32 : i32 to vector<8x128xi32>
    %100 = arith.cmpi sgt, %9, %99 : vector<8x128xi32>
    %c8_i32_41 = arith.constant 8 : i32
    %101 = arith.muli %c3_i32, %c8_i32_41 : i32
    %102 = tpu.assume_multiple %101, 8 : i32
    %103 = arith.index_cast %102 : i32 to index
    %c0_42 = arith.constant 0 : index
    %104 = vector.load %arg11[%103, %c0_42] : memref<64x128xf32, #tpu.memory_space<vmem>>, vector<8x128xf32>
    %105 = vector.extract_strided_slice %84 {offsets = [0, 0], sizes = [8, 128], strides = [1, 1]} : vector<8x256xf32> to vector<8x128xf32>
    %106 = arith.addf %104, %105 : vector<8x128xf32>
    %107 = math.tanh %106 : vector<8x128xf32>
    %108 = arith.select %100, %107, %82 : vector<8x128xi1>, vector<8x128xf32>
    %109 = arith.truncf %108 : vector<8x128xf32> to vector<8x128xbf16>
    %cst_43 = arith.constant dense<0.000000e+00> : vector<8x256xf32>
    %110 = tpu.matmul %109, %16, %cst_43 {dimension_numbers = #tpu.dot_dimension_numbers<[1], [0], [0], [1], [0, 0, 1, 1], [], []>} : vector<8x128xbf16>, vector<128x256xbf16>, vector<8x256xf32> -> vector<8x256xf32>
    %111 = vector.extract_strided_slice %110 {offsets = [0, 128], sizes = [8, 128], strides = [1, 1]} : vector<8x256xf32> to vector<8x128xf32>
    %112 = arith.addf %111, %91 : vector<8x128xf32>
    %113 = arith.addf %112, %12 : vector<8x128xf32>
    %114 = math.tanh %113 : vector<8x128xf32>
    %115 = arith.select %100, %114, %89 : vector<8x128xi1>, vector<8x128xf32>
    %116 = arith.truncf %115 : vector<8x128xf32> to vector<8x128xbf16>
    %cst_44 = arith.constant dense<0.000000e+00> : vector<8x128xf32>
    %117 = tpu.matmul %116, %17, %cst_44 {dimension_numbers = #tpu.dot_dimension_numbers<[1], [0], [0], [1], [0, 0, 1, 1], [], []>} : vector<8x128xbf16>, vector<128x128xbf16>, vector<8x128xf32> -> vector<8x128xf32>
    %cst_45 = arith.constant 0.000000e+00 : f32
    %118 = vector.broadcast %cst_45 : f32 to vector<8x128xf32>
    %119 = arith.select %100, %115, %118 : vector<8x128xi1>, vector<8x128xf32>
    %120 = arith.truncf %119 : vector<8x128xf32> to vector<8x128xbf16>
    %cst_46 = arith.constant dense<0.000000e+00> : vector<8x256xf32>
    %121 = tpu.matmul %120, %18, %cst_46 {dimension_numbers = #tpu.dot_dimension_numbers<[1], [0], [0], [1], [0, 0, 1, 1], [], []>} : vector<8x128xbf16>, vector<128x256xbf16>, vector<8x256xf32> -> vector<8x256xf32>
    %122 = arith.addf %121, %15 : vector<8x256xf32>
    %123 = arith.index_cast %102 : i32 to index
    %c0_47 = arith.constant 0 : index
    %124 = vector.load %arg9[%123, %c0_47] : memref<64x256xf32, #tpu.memory_space<vmem>>, vector<8x256xf32>
    tpu.vector_store %arg9[%123, %c0_47], %122 {strides = array<i32>} : memref<64x256xf32, #tpu.memory_space<vmem>>, vector<8x256xf32>,
    %c4_i32 = arith.constant 4 : i32
    %125 = vector.broadcast %c4_i32 : i32 to vector<8x128xi32>
    %126 = arith.cmpi sgt, %9, %125 : vector<8x128xi32>
    %c8_i32_48 = arith.constant 8 : i32
    %127 = arith.muli %c4_i32, %c8_i32_48 : i32
    %128 = tpu.assume_multiple %127, 8 : i32
    %129 = arith.index_cast %128 : i32 to index
    %c0_49 = arith.constant 0 : index
    %130 = vector.load %arg11[%129, %c0_49] : memref<64x128xf32, #tpu.memory_space<vmem>>, vector<8x128xf32>
    %131 = vector.extract_strided_slice %110 {offsets = [0, 0], sizes = [8, 128], strides = [1, 1]} : vector<8x256xf32> to vector<8x128xf32>
    %132 = arith.addf %130, %131 : vector<8x128xf32>
    %133 = math.tanh %132 : vector<8x128xf32>
    %134 = arith.select %126, %133, %108 : vector<8x128xi1>, vector<8x128xf32>
    %135 = arith.truncf %134 : vector<8x128xf32> to vector<8x128xbf16>
    %cst_50 = arith.constant dense<0.000000e+00> : vector<8x256xf32>
    %136 = tpu.matmul %135, %16, %cst_50 {dimension_numbers = #tpu.dot_dimension_numbers<[1], [0], [0], [1], [0, 0, 1, 1], [], []>} : vector<8x128xbf16>, vector<128x256xbf16>, vector<8x256xf32> -> vector<8x256xf32>
    %137 = vector.extract_strided_slice %136 {offsets = [0, 128], sizes = [8, 128], strides = [1, 1]} : vector<8x256xf32> to vector<8x128xf32>
    %138 = arith.addf %137, %117 : vector<8x128xf32>
    %139 = arith.addf %138, %12 : vector<8x128xf32>
    %140 = math.tanh %139 : vector<8x128xf32>
    %141 = arith.select %126, %140, %115 : vector<8x128xi1>, vector<8x128xf32>
    %142 = arith.truncf %141 : vector<8x128xf32> to vector<8x128xbf16>
    %cst_51 = arith.constant dense<0.000000e+00> : vector<8x128xf32>
    %143 = tpu.matmul %142, %17, %cst_51 {dimension_numbers = #tpu.dot_dimension_numbers<[1], [0], [0], [1], [0, 0, 1, 1], [], []>} : vector<8x128xbf16>, vector<128x128xbf16>, vector<8x128xf32> -> vector<8x128xf32>
    %cst_52 = arith.constant 0.000000e+00 : f32
    %144 = vector.broadcast %cst_52 : f32 to vector<8x128xf32>
    %145 = arith.select %126, %141, %144 : vector<8x128xi1>, vector<8x128xf32>
    %146 = arith.truncf %145 : vector<8x128xf32> to vector<8x128xbf16>
    %cst_53 = arith.constant dense<0.000000e+00> : vector<8x256xf32>
    %147 = tpu.matmul %146, %18, %cst_53 {dimension_numbers = #tpu.dot_dimension_numbers<[1], [0], [0], [1], [0, 0, 1, 1], [], []>} : vector<8x128xbf16>, vector<128x256xbf16>, vector<8x256xf32> -> vector<8x256xf32>
    %148 = arith.addf %147, %15 : vector<8x256xf32>
    %149 = arith.index_cast %128 : i32 to index
    %c0_54 = arith.constant 0 : index
    %150 = vector.load %arg9[%149, %c0_54] : memref<64x256xf32, #tpu.memory_space<vmem>>, vector<8x256xf32>
    tpu.vector_store %arg9[%149, %c0_54], %148 {strides = array<i32>} : memref<64x256xf32, #tpu.memory_space<vmem>>, vector<8x256xf32>,
    %c5_i32 = arith.constant 5 : i32
    %151 = vector.broadcast %c5_i32 : i32 to vector<8x128xi32>
    %152 = arith.cmpi sgt, %9, %151 : vector<8x128xi32>
    %c8_i32_55 = arith.constant 8 : i32
    %153 = arith.muli %c5_i32, %c8_i32_55 : i32
    %154 = tpu.assume_multiple %153, 8 : i32
    %155 = arith.index_cast %154 : i32 to index
    %c0_56 = arith.constant 0 : index
    %156 = vector.load %arg11[%155, %c0_56] : memref<64x128xf32, #tpu.memory_space<vmem>>, vector<8x128xf32>
    %157 = vector.extract_strided_slice %136 {offsets = [0, 0], sizes = [8, 128], strides = [1, 1]} : vector<8x256xf32> to vector<8x128xf32>
    %158 = arith.addf %156, %157 : vector<8x128xf32>
    %159 = math.tanh %158 : vector<8x128xf32>
    %160 = arith.select %152, %159, %134 : vector<8x128xi1>, vector<8x128xf32>
    %161 = arith.truncf %160 : vector<8x128xf32> to vector<8x128xbf16>
    %cst_57 = arith.constant dense<0.000000e+00> : vector<8x256xf32>
    %162 = tpu.matmul %161, %16, %cst_57 {dimension_numbers = #tpu.dot_dimension_numbers<[1], [0], [0], [1], [0, 0, 1, 1], [], []>} : vector<8x128xbf16>, vector<128x256xbf16>, vector<8x256xf32> -> vector<8x256xf32>
    %163 = vector.extract_strided_slice %162 {offsets = [0, 128], sizes = [8, 128], strides = [1, 1]} : vector<8x256xf32> to vector<8x128xf32>
    %164 = arith.addf %163, %143 : vector<8x128xf32>
    %165 = arith.addf %164, %12 : vector<8x128xf32>
    %166 = math.tanh %165 : vector<8x128xf32>
    %167 = arith.select %152, %166, %141 : vector<8x128xi1>, vector<8x128xf32>
    %168 = arith.truncf %167 : vector<8x128xf32> to vector<8x128xbf16>
    %cst_58 = arith.constant dense<0.000000e+00> : vector<8x128xf32>
    %169 = tpu.matmul %168, %17, %cst_58 {dimension_numbers = #tpu.dot_dimension_numbers<[1], [0], [0], [1], [0, 0, 1, 1], [], []>} : vector<8x128xbf16>, vector<128x128xbf16>, vector<8x128xf32> -> vector<8x128xf32>
    %cst_59 = arith.constant 0.000000e+00 : f32
    %170 = vector.broadcast %cst_59 : f32 to vector<8x128xf32>
    %171 = arith.select %152, %167, %170 : vector<8x128xi1>, vector<8x128xf32>
    %172 = arith.truncf %171 : vector<8x128xf32> to vector<8x128xbf16>
    %cst_60 = arith.constant dense<0.000000e+00> : vector<8x256xf32>
    %173 = tpu.matmul %172, %18, %cst_60 {dimension_numbers = #tpu.dot_dimension_numbers<[1], [0], [0], [1], [0, 0, 1, 1], [], []>} : vector<8x128xbf16>, vector<128x256xbf16>, vector<8x256xf32> -> vector<8x256xf32>
    %174 = arith.addf %173, %15 : vector<8x256xf32>
    %175 = arith.index_cast %154 : i32 to index
    %c0_61 = arith.constant 0 : index
    %176 = vector.load %arg9[%175, %c0_61] : memref<64x256xf32, #tpu.memory_space<vmem>>, vector<8x256xf32>
    tpu.vector_store %arg9[%175, %c0_61], %174 {strides = array<i32>} : memref<64x256xf32, #tpu.memory_space<vmem>>, vector<8x256xf32>,
    %c6_i32 = arith.constant 6 : i32
    %177 = vector.broadcast %c6_i32 : i32 to vector<8x128xi32>
    %178 = arith.cmpi sgt, %9, %177 : vector<8x128xi32>
    %c8_i32_62 = arith.constant 8 : i32
    %179 = arith.muli %c6_i32, %c8_i32_62 : i32
    %180 = tpu.assume_multiple %179, 8 : i32
    %181 = arith.index_cast %180 : i32 to index
    %c0_63 = arith.constant 0 : index
    %182 = vector.load %arg11[%181, %c0_63] : memref<64x128xf32, #tpu.memory_space<vmem>>, vector<8x128xf32>
    %183 = vector.extract_strided_slice %162 {offsets = [0, 0], sizes = [8, 128], strides = [1, 1]} : vector<8x256xf32> to vector<8x128xf32>
    %184 = arith.addf %182, %183 : vector<8x128xf32>
    %185 = math.tanh %184 : vector<8x128xf32>
    %186 = arith.select %178, %185, %160 : vector<8x128xi1>, vector<8x128xf32>
    %187 = arith.truncf %186 : vector<8x128xf32> to vector<8x128xbf16>
    %cst_64 = arith.constant dense<0.000000e+00> : vector<8x256xf32>
    %188 = tpu.matmul %187, %16, %cst_64 {dimension_numbers = #tpu.dot_dimension_numbers<[1], [0], [0], [1], [0, 0, 1, 1], [], []>} : vector<8x128xbf16>, vector<128x256xbf16>, vector<8x256xf32> -> vector<8x256xf32>
    %189 = vector.extract_strided_slice %188 {offsets = [0, 128], sizes = [8, 128], strides = [1, 1]} : vector<8x256xf32> to vector<8x128xf32>
    %190 = arith.addf %189, %169 : vector<8x128xf32>
    %191 = arith.addf %190, %12 : vector<8x128xf32>
    %192 = math.tanh %191 : vector<8x128xf32>
    %193 = arith.select %178, %192, %167 : vector<8x128xi1>, vector<8x128xf32>
    %194 = arith.truncf %193 : vector<8x128xf32> to vector<8x128xbf16>
    %cst_65 = arith.constant dense<0.000000e+00> : vector<8x128xf32>
    %195 = tpu.matmul %194, %17, %cst_65 {dimension_numbers = #tpu.dot_dimension_numbers<[1], [0], [0], [1], [0, 0, 1, 1], [], []>} : vector<8x128xbf16>, vector<128x128xbf16>, vector<8x128xf32> -> vector<8x128xf32>
    %cst_66 = arith.constant 0.000000e+00 : f32
    %196 = vector.broadcast %cst_66 : f32 to vector<8x128xf32>
    %197 = arith.select %178, %193, %196 : vector<8x128xi1>, vector<8x128xf32>
    %198 = arith.truncf %197 : vector<8x128xf32> to vector<8x128xbf16>
    %cst_67 = arith.constant dense<0.000000e+00> : vector<8x256xf32>
    %199 = tpu.matmul %198, %18, %cst_67 {dimension_numbers = #tpu.dot_dimension_numbers<[1], [0], [0], [1], [0, 0, 1, 1], [], []>} : vector<8x128xbf16>, vector<128x256xbf16>, vector<8x256xf32> -> vector<8x256xf32>
    %200 = arith.addf %199, %15 : vector<8x256xf32>
    %201 = arith.index_cast %180 : i32 to index
    %c0_68 = arith.constant 0 : index
    %202 = vector.load %arg9[%201, %c0_68] : memref<64x256xf32, #tpu.memory_space<vmem>>, vector<8x256xf32>
    tpu.vector_store %arg9[%201, %c0_68], %200 {strides = array<i32>} : memref<64x256xf32, #tpu.memory_space<vmem>>, vector<8x256xf32>,
    %c7_i32 = arith.constant 7 : i32
    %203 = vector.broadcast %c7_i32 : i32 to vector<8x128xi32>
    %204 = arith.cmpi sgt, %9, %203 : vector<8x128xi32>
    %c8_i32_69 = arith.constant 8 : i32
    %205 = arith.muli %c7_i32, %c8_i32_69 : i32
    %206 = tpu.assume_multiple %205, 8 : i32
    %207 = arith.index_cast %206 : i32 to index
    %c0_70 = arith.constant 0 : index
    %208 = vector.load %arg11[%207, %c0_70] : memref<64x128xf32, #tpu.memory_space<vmem>>, vector<8x128xf32>
    %209 = vector.extract_strided_slice %188 {offsets = [0, 0], sizes = [8, 128], strides = [1, 1]} : vector<8x256xf32> to vector<8x128xf32>
    %210 = arith.addf %208, %209 : vector<8x128xf32>
    %211 = math.tanh %210 : vector<8x128xf32>
    %212 = arith.select %204, %211, %186 : vector<8x128xi1>, vector<8x128xf32>
    %213 = arith.truncf %212 : vector<8x128xf32> to vector<8x128xbf16>
    %cst_71 = arith.constant dense<0.000000e+00> : vector<8x256xf32>
    %214 = tpu.matmul %213, %16, %cst_71 {dimension_numbers = #tpu.dot_dimension_numbers<[1], [0], [0], [1], [0, 0, 1, 1], [], []>} : vector<8x128xbf16>, vector<128x256xbf16>, vector<8x256xf32> -> vector<8x256xf32>
    %215 = vector.extract_strided_slice %214 {offsets = [0, 128], sizes = [8, 128], strides = [1, 1]} : vector<8x256xf32> to vector<8x128xf32>
    %216 = arith.addf %215, %195 : vector<8x128xf32>
    %217 = arith.addf %216, %12 : vector<8x128xf32>
    %218 = math.tanh %217 : vector<8x128xf32>
    %219 = arith.select %204, %218, %193 : vector<8x128xi1>, vector<8x128xf32>
    %220 = arith.truncf %219 : vector<8x128xf32> to vector<8x128xbf16>
    %cst_72 = arith.constant dense<0.000000e+00> : vector<8x128xf32>
    %221 = tpu.matmul %220, %17, %cst_72 {dimension_numbers = #tpu.dot_dimension_numbers<[1], [0], [0], [1], [0, 0, 1, 1], [], []>} : vector<8x128xbf16>, vector<128x128xbf16>, vector<8x128xf32> -> vector<8x128xf32>
    %cst_73 = arith.constant 0.000000e+00 : f32
    %222 = vector.broadcast %cst_73 : f32 to vector<8x128xf32>
    %223 = arith.select %204, %219, %222 : vector<8x128xi1>, vector<8x128xf32>
    %224 = arith.truncf %223 : vector<8x128xf32> to vector<8x128xbf16>
    %cst_74 = arith.constant dense<0.000000e+00> : vector<8x256xf32>
    %225 = tpu.matmul %224, %18, %cst_74 {dimension_numbers = #tpu.dot_dimension_numbers<[1], [0], [0], [1], [0, 0, 1, 1], [], []>} : vector<8x128xbf16>, vector<128x256xbf16>, vector<8x256xf32> -> vector<8x256xf32>
    %226 = arith.addf %225, %15 : vector<8x256xf32>
    %227 = arith.index_cast %206 : i32 to index
    %c0_75 = arith.constant 0 : index
    %228 = vector.load %arg9[%227, %c0_75] : memref<64x256xf32, #tpu.memory_space<vmem>>, vector<8x256xf32>
    tpu.vector_store %arg9[%227, %c0_75], %226 {strides = array<i32>} : memref<64x256xf32, #tpu.memory_space<vmem>>, vector<8x256xf32>,
    %c8_i32_76 = arith.constant 8 : i32
    %c0_77 = arith.constant 0 : index
    %c0_78 = arith.constant 0 : index
    %c0_79 = arith.constant 0 : index
    %229 = vector.load %arg10[%c0_77, %c0_78, %c0_79] : memref<2x8x128xf32, #tpu.memory_space<vmem>>, vector<1x8x128xf32>
    %230 = vector.shape_cast %229 : vector<1x8x128xf32> to vector<8x128xf32>
    %231 = vector.shape_cast %212 : vector<8x128xf32> to vector<1x8x128xf32>
    tpu.vector_store %arg10[%c0_77, %c0_78, %c0_79], %231 {strides = array<i32>} : memref<2x8x128xf32, #tpu.memory_space<vmem>>, vector<1x8x128xf32>,
    %c1 = arith.constant 1 : index
    %c0_80 = arith.constant 0 : index
    %c0_81 = arith.constant 0 : index
    %232 = vector.load %arg10[%c1, %c0_80, %c0_81] : memref<2x8x128xf32, #tpu.memory_space<vmem>>, vector<1x8x128xf32>
    %233 = vector.shape_cast %232 : vector<1x8x128xf32> to vector<8x128xf32>
    %234 = vector.shape_cast %219 : vector<8x128xf32> to vector<1x8x128xf32>
    tpu.vector_store %arg10[%c1, %c0_80, %c0_81], %234 {strides = array<i32>} : memref<2x8x128xf32, #tpu.memory_space<vmem>>, vector<1x8x128xf32>,
    return
  }
}

</mosaic_0001>

<bundles_post_ra>
// kernel: tpu_custom_call.1
= control target key start
LH: loop header
LB: loop body
LE: loop exit
PB: predicated region body
PF: predicated region fallthrough
CT: control target
= control target key end

     0   :  { %16 = vsyncpa [#allocation4], 0  ;;  %s3235_s0 = inlined_call_operand.hbm [shape: bf16[64,64], index: 0, kind: input, shape index: {}]   ;;  %s3236_s1 = inlined_call_operand.vmem [shape: s32[8,1], index: 1, kind: input, shape index: {}]   ;;  %s3237_s2 = inlined_call_operand.hbm [shape: bf16[64,128], index: 2, kind: input, shape index: {}]   ;;  %s3238_s3 = inlined_call_operand.vmem [shape: f32[1,128], index: 3, kind: input, shape index: {}]   ;;  %s3239_s4 = inlined_call_operand.hbm [shape: bf16[128,256], index: 4, kind: input, shape index: {}]   ;;  %s3240_s5 = inlined_call_operand.hbm [shape: bf16[128,128], index: 5, kind: input, shape index: {}]   ;;  %s3241_s6 = inlined_call_operand.vmem [shape: f32[1,128], index: 6, kind: input, shape index: {}]   ;;  %s3242_s7 = inlined_call_operand.hbm [shape: bf16[128,256], index: 7, kind: input, shape index: {}]   ;;  %s3243_s8 = inlined_call_operand.vmem [shape: f32[1,256], index: 8, kind: input, shape index: {}]   ;;  %s3244_s9 = inlined_call_operand.hbm [shape: f32[64,256], index: 9, kind: output, shape index: {0}]   ;;  %s3245_s10 = inlined_call_operand.hbm [shape: f32[2,8,128], index: 10, kind: output, shape index: {1}]  }
   0x1   :  { %17 = vsyncpa [#allocation7], 0 }
   0x2   :  { %18 = vsyncpa [#allocation10], 0 }
   0x3   :  { %19 = vsyncpa [#allocation5], 0 }
   0x4   :  { %20 = vsyncpa [#allocation14], 0  ;;  %s2291_s13 = smov [#allocation6]   ;;  %s2292_s15 = smov [#allocation9]  }
   0x5   :  { %s40_s14 = sshll.u32 %s2291_s13, 4  ;;  %s66_s16 = sshll.u32 %s2292_s15, 4  ;;  %s41_s14 = int_to_ptr.vmem [resolvable:$true] %s40_s14  ;;  %s2362_s16 = int_to_ptr.vmem [resolvable:$true] %s66_s16 }
   0x6   :  { %s2127_s19 = scalar_lea.hbm %s3237_s2, 512 }
   0x7   :  { %p2128_p0 = scmp.ne.s32.totalorder %s3237_s2, %s2127_s19  ;;  %p2131_p1 = scmp.lt.u32.totalorder %s2127_s19, %s3237_s2 }
   0x9   :  { %p2133_p2 = pnand %p2131_p1, %p2128_p0 }
   0xb   :  { %2136 = shalt.err (!%p2133_p2)
}
   0xc   :  { %s2137_s24 = scalar_lea.vmem %s41_s14, 512  ;;  %p2142_p4 = scmp.lt.s32.totalorder %s41_s14, %s41_s14 }
   0xd   :  { %p2138_p3 = scmp.ne.s32.totalorder %s41_s14, %s2137_s24  ;;  %p2143_p5 = scmp.lt.s32.totalorder %s2137_s24, %s2137_s24 }
   0xf   :  { %p2144_p6 = por %p2143_p5, %p2142_p4 }
  0x11   :  { %p2145_p7 = pnand %p2144_p6, %p2138_p3 }
  0x13   :  { %2148 = shalt.err (!%p2145_p7)
}
  0x14   :  { %s2293_s25 = smov 64   ;;  %s2294_s26 = smov 4  }
  0x15   :  { %46 = dma.hbm_to_vmem [thread:$0]  %s3237_s2, 512, %s41_s14, [#allocation7], %s2293_s25, %s2293_s25, %s2294_s26  }
  0x16   :  { %s2149_s11 = scalar_lea.hbm %s3240_s5, 1024 }
  0x17   :  { %p2150_p8 = scmp.ne.s32.totalorder %s3240_s5, %s2149_s11  ;;  %p2153_p9 = scmp.lt.u32.totalorder %s2149_s11, %s3240_s5 }
  0x19   :  { %p2155_p10 = pnand %p2153_p9, %p2150_p8 }
  0x1b   :  { %2158 = shalt.err (!%p2155_p10)
}
  0x1c   :  { %s2159_s18 = scalar_lea.vmem %s2362_s16, 1024  ;;  %p2164_p12 = scmp.lt.s32.totalorder %s2362_s16, %s2362_s16 }
  0x1d   :  { %p2160_p11 = scmp.ne.s32.totalorder %s2362_s16, %s2159_s18  ;;  %p2165_p13 = scmp.lt.s32.totalorder %s2159_s18, %s2159_s18 }
  0x1f   :  { %p2166_p0 = por %p2165_p13, %p2164_p12 }
  0x21   :  { %p2167_p1 = pnand %p2166_p0, %p2160_p11 }
  0x23   :  { %2170 = shalt.err (!%p2167_p1)
}
  0x24   :  { %72 = dma.hbm_to_vmem [thread:$0]  %s3240_s5, 1024, %s2362_s16, [#allocation10], %s2293_s25, %s2293_s25, %s2294_s26  }
  0x25   :  { %s2295_s19 = smov [#allocation3]   ;;  %s2296_s21 = smov [#allocation8]  }
  0x26   :  { %s26_s20 = sshll.u32 %s2295_s19, 4  ;;  %s54_s22 = sshll.u32 %s2296_s21, 4  ;;  %s27_s20 = int_to_ptr.vmem [resolvable:$true] %s26_s20  ;;  %s2399_s22 = int_to_ptr.vmem [resolvable:$true] %s54_s22 }
  0x27   :  { %s2171_s27 = scalar_lea.hbm %s3235_s0, 512 }
  0x28   :  { %p2172_p2 = scmp.ne.s32.totalorder %s3235_s0, %s2171_s27  ;;  %p2175_p3 = scmp.lt.u32.totalorder %s2171_s27, %s3235_s0 }
  0x2a   :  { %p2177_p4 = pnand %p2175_p3, %p2172_p2 }
  0x2c   :  { %2180 = shalt.err (!%p2177_p4)
}
  0x2d   :  { %s2181_s5 = scalar_lea.vmem %s27_s20, 512  ;;  %p2186_p6 = scmp.lt.s32.totalorder %s27_s20, %s27_s20 }
  0x2e   :  { %p2182_p5 = scmp.ne.s32.totalorder %s27_s20, %s2181_s5  ;;  %p2187_p7 = scmp.lt.s32.totalorder %s2181_s5, %s2181_s5 }
  0x30   :  { %p2188_p8 = por %p2187_p7, %p2186_p6 }
  0x32   :  { %p2189_p9 = pnand %p2188_p8, %p2182_p5 }
  0x34   :  { %2192 = shalt.err (!%p2189_p9)
}
  0x35   :  { %32 = dma.hbm_to_vmem [thread:$0]  %s3235_s0, 512, %s27_s20, [#allocation4], %s2293_s25, %s2293_s25, %s2294_s26  }
  0x36   :  { %s2193_s17 = scalar_lea.hbm %s3239_s4, 2048 }
  0x37   :  { %p2194_p10 = scmp.ne.s32.totalorder %s3239_s4, %s2193_s17  ;;  %p2197_p11 = scmp.lt.u32.totalorder %s2193_s17, %s3239_s4 }
  0x39   :  { %p2199_p12 = pnand %p2197_p11, %p2194_p10 }
  0x3b   :  { %2202 = shalt.err (!%p2199_p12)
}
  0x3c   :  { %s2203_s21 = scalar_lea.vmem %s2399_s22, 2048  ;;  %p2208_p0 = scmp.lt.s32.totalorder %s2399_s22, %s2399_s22 }
  0x3d   :  { %p2204_p13 = scmp.ne.s32.totalorder %s2399_s22, %s2203_s21  ;;  %p2209_p1 = scmp.lt.s32.totalorder %s2203_s21, %s2203_s21 }
  0x3f   :  { %p2210_p2 = por %p2209_p1, %p2208_p0 }
  0x41   :  { %p2211_p3 = pnand %p2210_p2, %p2204_p13 }
  0x43   :  { %2214 = shalt.err (!%p2211_p3)
}
  0x44   :  { %s2297_s0 = smov 128   ;;  %s2298_s25 = smov 8  }
  0x45   :  { %60 = dma.hbm_to_vmem [thread:$0]  %s3239_s4, 2048, %s2399_s22, [#allocation7], %s2297_s0, %s2297_s0, %s2298_s25  }
  0x46   :  { %s2299_s23 = smov [#allocation11]   ;;  %s2215_s29 = scalar_lea.hbm %s3242_s7, 2048 }
  0x47   :  { %s80_s24 = sshll.u32 %s2299_s23, 4  ;;  %p2216_p4 = scmp.ne.s32.totalorder %s3242_s7, %s2215_s29  ;;  %s81_s24 = int_to_ptr.vmem [resolvable:$true] %s80_s24 }
  0x48   :  { %p2219_p5 = scmp.lt.u32.totalorder %s2215_s29, %s3242_s7 }
  0x4a   :  { %p2221_p6 = pnand %p2219_p5, %p2216_p4 }
  0x4c   :  { %2224 = shalt.err (!%p2221_p6)
}
  0x4d   :  { %s2225_s12 = scalar_lea.vmem %s81_s24, 2048  ;;  %p2230_p8 = scmp.lt.s32.totalorder %s81_s24, %s81_s24 }
  0x4e   :  { %p2226_p7 = scmp.ne.s32.totalorder %s81_s24, %s2225_s12  ;;  %p2231_p9 = scmp.lt.s32.totalorder %s2225_s12, %s2225_s12 }
  0x50   :  { %p2232_p10 = por %p2231_p9, %p2230_p8 }
  0x52   :  { %p2233_p11 = pnand %p2232_p10, %p2226_p7 }
  0x54   :  { %2236 = shalt.err (!%p2233_p11)
}
  0x55   :  { %86 = dma.hbm_to_vmem [thread:$0]  %s3242_s7, 2048, %s81_s24, [#allocation10], %s2297_s0, %s2297_s0, %s2298_s25  }
  0x56   :  { %2281 = dma.done.wait [#allocation4], 512  }
  0x57   :  { %2282 = vsyncadd [#allocation4], 4294966784 }
  0x58   :  { %2283 = dma.done.wait [#allocation7], 2560  }
  0x59   :  { %2284 = vsyncadd [#allocation7], 4294964736 }
  0x5a   :  { %2285 = dma.done.wait [#allocation10], 3072  }
  0x5b   :  { %2286 = vsyncadd [#allocation10], 4294964224  ;;  %v3248_v0 = vmov 0   ;;  %v1993_v1 = vld [vmem:[#allocation6] sm:$0xff]   ;;  %v1994_v2 = vld [vmem:[#allocation6 + $0x8] sm:$0xff]   ;;  %vm172_vm0 = vcmask 523264  }
  0x5c   :  { %1992 = vset.pattern.permute.xlu0 %v3248_v0  ;;  %447 = vmatprep.mubr.bf16.mxu1 %v3248_v0  ;;  %v1995_v3 = vld [vmem:[#allocation6 + $0x10] sm:$0xff]   ;;  %v1997_v4 = vld [vmem:[#allocation3] sm:$0xff]   ;;  %v1996_v8 = vld [vmem:[#allocation6 + $0x18] sm:$0xff]   ;;  %v3246_v26 = vmov 0.0   ;;  %vm2302_vm3 = vmmov 0  }
  0x5d   :  { %1820 = vmatprep.subr.bf16.mxu0 %v1993_v1  ;;  %1828 = vmatprep.mubr.msk.bf16.mxu0 %vm172_vm0, %v1997_v4  ;;  %v258_v5 = vld [vmem:[%s3236_s1] sm:$0xff]  ;;  %v2461_v9 = vld [vmem:[#allocation8 + $0x14] ss:$8 sps:$4 sm:$0xff]   ;;  %v2465_v10 = vld [vmem:[#allocation8 + $0x10] ss:$8 sps:$4 sm:$0xff]  }
  0x5e   :  { %1821 = vmatpush3.bf16.msra.mxu0 %v1993_v1  ;;  %260 = vperm.xlu0 %1992, %v258_v5   ;;  %v2457_v6 = vld [vmem:[#allocation8 + $0x4] ss:$8 sps:$4 sm:$0xff]   ;;  %v2459_v7 = vld [vmem:[#allocation8] ss:$8 sps:$4 sm:$0xff]   ;;  %v2472_v14 = vld [vmem:[#allocation8 + $0x34] ss:$8 sps:$4 sm:$0xff]  }
  0x5f   :  { %1822 = vmatprep.subr.bf16.mxu0 %v1994_v2  ;;  %415 = vmatprep.subr.bf16.mxu1 %v2457_v6  ;;  %v2468_v11 = vld [vmem:[#allocation8 + $0x24] ss:$8 sps:$4 sm:$0xff]   ;;  %v2470_v13 = vld [vmem:[#allocation8 + $0x20] ss:$8 sps:$4 sm:$0xff]   ;;  %v2476_v15 = vld [vmem:[#allocation8 + $0x30] ss:$8 sps:$4 sm:$0xff]  }
  0x60   :  { %416 = vmatpush1.bf16.msra.mxu1 %v2459_v7  ;;  %v1998_v12 = vld [vmem:[#allocation3 + $0x8] sm:$0xff]   ;;  %v2488_v18 = vld [vmem:[#allocation8 + $0x54] ss:$8 sps:$4 sm:$0xff]   ;;  %v2490_v19 = vld [vmem:[#allocation8 + $0x50] ss:$8 sps:$4 sm:$0xff]  }
  0x61   :  { %417 = vmatprep.subr.bf16.mxu1 %v2461_v9  ;;  %v2482_v16 = vld [vmem:[#allocation8 + $0x44] ss:$8 sps:$4 sm:$0xff]   ;;  %v2484_v17 = vld [vmem:[#allocation8 + $0x40] ss:$8 sps:$4 sm:$0xff]   ;;  %v2499_v22 = vld [vmem:[#allocation8 + $0x74] ss:$8 sps:$4 sm:$0xff]  }
  0x62   :  { %1823 = vmatpush3.bf16.msra.mxu0 %v1994_v2  ;;  %v2492_v20 = vld [vmem:[#allocation8 + $0x64] ss:$8 sps:$4 sm:$0xff]   ;;  %v2496_v21 = vld [vmem:[#allocation8 + $0x60] ss:$8 sps:$4 sm:$0xff]   ;;  %v2502_v23 = vld [vmem:[#allocation8 + $0x70] ss:$8 sps:$4 sm:$0xff]  }
  0x63   :  { %1824 = vmatprep.subr.bf16.mxu0 %v1995_v3  ;;  %v2506_v24 = vld [vmem:[#allocation9] sm:$0xff]   ;;  %v2513_v27 = vld [vmem:[#allocation9 + $0x8] sm:$0xff]   ;;  %v2517_v28 = vld [vmem:[#allocation9 + $0x10] sm:$0xff]  }
  0x64   :  { %418 = vmatpush1.bf16.msra.mxu1 %v2465_v10  ;;  %v2508_v25 = vld [vmem:[#allocation11 + $0x4] ss:$8 sps:$4 sm:$0xff]   ;;  %v2521_v29 = vld [vmem:[#allocation9 + $0x18] sm:$0xff]   ;;  %v2529_v30 = vld [vmem:[%s3238_s3] ss:$0 sm:$0xff] }
  0x65   :  { %419 = vmatprep.subr.bf16.mxu1 %v2468_v11  ;;  %v2548_v39 = vld [vmem:[#allocation11] ss:$8 sps:$4 sm:$0xff]   ;;  %v2552_v41 = vld [vmem:[#allocation11 + $0x14] ss:$8 sps:$4 sm:$0xff]   ;;  %v2557_v42 = vld [vmem:[#allocation11 + $0x10] ss:$8 sps:$4 sm:$0xff]  }
  0x66   :  { %1825 = vmatpush3.bf16.msra.mxu0 %v1995_v3  ;;  %v2561_v43 = vld [vmem:[#allocation11 + $0x24] ss:$8 sps:$4 sm:$0xff]   ;;  %v2564_v44 = vld [vmem:[#allocation11 + $0x20] ss:$8 sps:$4 sm:$0xff]   ;;  %v2567_v45 = vld [vmem:[#allocation11 + $0x34] ss:$8 sps:$4 sm:$0xff]  }
  0x67   :  { %1826 = vmatprep.subr.bf16.mxu0 %v1996_v8  ;;  %v2570_v46 = vld [vmem:[#allocation11 + $0x30] ss:$8 sps:$4 sm:$0xff]   ;;  %v2574_v47 = vld [vmem:[#allocation9 + $0x20] sm:$0xff]   ;;  %v2584_v51 = vld [vmem:[#allocation9 + $0x28] sm:$0xff]  }
  0x68   :  { %420 = vmatpush1.bf16.msra.mxu1 %v2470_v13  ;;  %v2576_v48 = vld [vmem:[#allocation11 + $0x44] ss:$8 sps:$4 sm:$0xff]   ;;  %v2578_v49 = vld [vmem:[#allocation11 + $0x40] ss:$8 sps:$4 sm:$0xff]   ;;  %v2043_v50 = vld [vmem:[#allocation3 + $0x10] sm:$0xff]  }
  0x69   :  { %421 = vmatprep.subr.bf16.mxu1 %v2472_v14  ;;  %v2586_v52 = vld [vmem:[#allocation11 + $0x54] ss:$8 sps:$4 sm:$0xff]   ;;  %v2588_v54 = vld [vmem:[#allocation11 + $0x50] ss:$8 sps:$4 sm:$0xff]   ;;  %v2598_v56 = vld [vmem:[#allocation11 + $0x64] ss:$8 sps:$4 sm:$0xff]  }
  0x6a   :  { %1827 = vmatpush3.bf16.msra.mxu0 %v1996_v8  ;;  %v2047_v53 = vld [vmem:[#allocation3 + $0x18] sm:$0xff]   ;;  %v2596_v55 = vld [vmem:[#allocation9 + $0x30] sm:$0xff]   ;;  %v2600_v57 = vld [vmem:[#allocation11 + $0x60] ss:$8 sps:$4 sm:$0xff]  }
  0x6b   :  { %1836 = vmatprep.subr.bf16.mxu0 %v3246_v26  ;;  %v2606_v58 = vld [vmem:[#allocation9 + $0x38] sm:$0xff]   ;;  %v2623_v62 = vld [vmem:[%s3241_s6] ss:$0 sm:$0xff] }
  0x6c   :  { %422 = vmatpush1.bf16.msra.mxu1 %v2476_v15  ;;  %v2608_v59 = vld [vmem:[#allocation11 + $0x74] ss:$8 sps:$4 sm:$0xff]   ;;  %v2610_v60 = vld [vmem:[#allocation11 + $0x70] ss:$8 sps:$4 sm:$0xff]  }
  0x6d   :  { %1829 = vmatmul.mubr.msk.bf16.vlgmr.msra.gmra.mrb[0].mxu0 %vm172_vm0, %v1998_v12  ;;  %423 = vmatprep.subr.bf16.mxu1 %v2482_v16  ;;  %3259 = vst [vmem:[#allocation21_spill] sm:$0xff] %v2608_v59  ;;  %3260 = vst [vmem:[#allocation22_spill] sm:$0xff] %v2610_v60 }
  0x6e   :  { %1837 = vmatpush3.bf16.msra.mxu0 %v2506_v24  ;;  %1832 = vmatprep.mubr.msk.bf16.mxu0 %vm172_vm0, %v2043_v50 }
  0x6f   :  { %1838 = vmatprep.subr.bf16.mxu0 %v3246_v26 }
  0x70   :  { %424 = vmatpush1.bf16.msra.mxu1 %v2484_v17 }
  0x71   :  { %425 = vmatprep.subr.bf16.mxu1 %v2488_v18 }
  0x72   :  { %1839 = vmatpush3.bf16.msra.mxu0 %v2513_v27 }
  0x73   :  { %1840 = vmatprep.subr.bf16.mxu0 %v3246_v26 }
  0x74   :  { %426 = vmatpush1.bf16.msra.mxu1 %v2490_v19 }
  0x75   :  { %427 = vmatprep.subr.bf16.mxu1 %v2492_v20  ;;  %1833 = vmatmul.mubr.msk.bf16.gmra.mrb[4].mxu0 %vm172_vm0, %v2047_v53 }
  0x76   :  { %1841 = vmatpush3.bf16.msra.mxu0 %v2517_v28  ;;  %1852 = vmatprep.mubr.msk.bf16.mxu0 %vm2302_vm3, %v3246_v26 }
  0x77   :  { %1842 = vmatprep.subr.bf16.mxu0 %v3246_v26 }
  0x78   :  { %428 = vmatpush1.bf16.msra.mxu1 %v2496_v21 }
  0x79   :  { %429 = vmatprep.subr.bf16.mxu1 %v2499_v22 }
  0x7a   :  { %1843 = vmatpush3.bf16.msra.mxu0 %v2521_v29 }
  0x7b   :  { %1844 = vmatprep.subr.bf16.mxu0 %v3246_v26 }
  0x7c   :  { %430 = vmatpush1.bf16.msra.mxu1 %v2502_v23 }
  0x7d   :  { %629 = vmatprep.subr.bf16.mxu1 %v2508_v25 }
  0x7e   :  { %1845 = vmatpush3.bf16.msra.mxu0 %v2574_v47 }
  0x7f   :  { %1846 = vmatprep.subr.bf16.mxu0 %v3246_v26 }
  0x82   :  { %1847 = vmatpush3.bf16.msra.mxu0 %v2584_v51 }
  0x83   :  { %1848 = vmatprep.subr.bf16.mxu0 %v3246_v26 }
  0x86   :  { %1849 = vmatpush3.bf16.msra.mxu0 %v2596_v55 }
  0x87   :  { %1850 = vmatprep.subr.bf16.mxu0 %v3246_v26 }
  0x8a   :  { %1851 = vmatpush3.bf16.msra.mxu0 %v2606_v58 }
  0x8b   :  { %682 = vmatprep.subr.bf16.mxu0 %v2457_v6 }
  0xdd   :  { %v2536_v36 = vpop.permute.xlu0 %260 }
  0xde   :  { %vm329_vm1 = vcmp.gt.s32.totalorder %v2536_v36, 0  ;;  %vm675_vm4 = vcmp.gt.s32.totalorder %v2536_v36, 1  ;;  %vm816_vm6 = vcmp.gt.s32.totalorder %v2536_v36, 2  ;;  %vm957_vm8 = vcmp.gt.s32.totalorder %v2536_v36, 3 }
  0xdf   :  { %vm2544_vm2 = vmpackc.low %vm329_vm1, %vm329_vm1  ;;  %vm1098_vm10 = vcmp.gt.s32.totalorder %v2536_v36, 4  ;;  %vm1239_vm12 = vcmp.gt.s32.totalorder %v2536_v36, 5  ;;  %vm1380_vm14 = vcmp.gt.s32.totalorder %v2536_v36, 6  ;;  %vm1521_vm15 = vcmp.gt.s32.totalorder %v2536_v36, 7 }
  0xe0   :  { %vm1728_vm5 = vmpackc.low %vm675_vm4, %vm675_vm4 }
  0xe1   :  { %vm1731_vm7 = vmpackc.low %vm816_vm6, %vm816_vm6 }
  0xe2   :  { %vm1734_vm9 = vmpackc.low %vm957_vm8, %vm957_vm8 }
  0xe3   :  { %vm1737_vm11 = vmpackc.low %vm1098_vm10, %vm1098_vm10 }
  0xe4   :  { %vm1740_vm13 = vmpackc.low %vm1239_vm12, %vm1239_vm12 }
  0xe5   :  { %vm1743_vm0 = vmpackc.low %vm1380_vm14, %vm1380_vm14 }
 0x140   :  { %v2531_v31 = vpop.f32.mrb[0].mxu0 }
 0x141   :  { %v219_v32 = vpop.f32.mrb[1].mxu0 }
 0x142   :  { %v220_v33 = vadd.f32 %v2529_v30, %v219_v32  ;;  %v2534_v34 = vpop.f32.mrb[2].mxu0 }
 0x143   :  { %3256 = vst [vmem:[#allocation20_spill] sm:$0xff] %v2534_v34  ;;  %v222_v35 = vpop.f32.mrb[3].mxu0 }
 0x144   :  { %2057 = vtanh.f32 %v220_v33  ;;  %v223_v61 = vadd.f32 %v2529_v30, %v222_v35 }
 0x148   :  { %v2696_v38 = vpop.f32.mrb[4].mxu0 }
 0x149   :  { %3261 = vst [vmem:[#allocation23_spill] sm:$0xff] %v2696_v38 }
 0x14e   :  { %v2539_v37 = vpop.eup %2057 }
 0x14f   :  { %v1696_v40 = vpack.c.bf16 %v2539_v37, %v2539_v37  ;;  %v333_v12 = vsel %vm329_vm1, %v2539_v37, 0.0 }
 0x151   :  { %1697 = vmatmul.mubr.msk.bf16.vlgmr.msra.gmra.mrb[0].mxu1 %vm2544_vm2, %v1696_v40  ;;  %v2698_v40 = vpop.f32.mrb[5].mxu0 }
 0x152   :  { %630 = vmatpush1.bf16.msra.mxu1 %v2548_v39  ;;  %661 = vmatprep.mubr.bf16.mxu1 %v3248_v0  ;;  %3262 = vst [vmem:[#allocation24_spill] sm:$0xff] %v2698_v40  ;;  %v2700_v50 = vpop.f32.mrb[6].mxu0 }
 0x153   :  { %631 = vmatprep.subr.bf16.mxu1 %v2552_v41  ;;  %3263 = vst [vmem:[#allocation25_spill] sm:$0xff] %v2700_v50  ;;  %v2702_v53 = vpop.f32.mrb[7].mxu0 }
 0x154   :  { %3264 = vst [vmem:[#allocation26_spill] sm:$0xff] %v2702_v53 }
 0x156   :  { %632 = vmatpush1.bf16.msra.mxu1 %v2557_v42 }
 0x157   :  { %633 = vmatprep.subr.bf16.mxu1 %v2561_v43 }
 0x15a   :  { %634 = vmatpush1.bf16.msra.mxu1 %v2564_v44 }
 0x15b   :  { %635 = vmatprep.subr.bf16.mxu1 %v2567_v45 }
 0x15e   :  { %636 = vmatpush1.bf16.msra.mxu1 %v2570_v46 }
 0x15f   :  { %637 = vmatprep.subr.bf16.mxu1 %v2576_v48 }
 0x162   :  { %638 = vmatpush1.bf16.msra.mxu1 %v2578_v49 }
 0x163   :  { %639 = vmatprep.subr.bf16.mxu1 %v2586_v52 }
 0x166   :  { %640 = vmatpush1.bf16.msra.mxu1 %v2588_v54 }
 0x167   :  { %641 = vmatprep.subr.bf16.mxu1 %v2598_v56 }
 0x16a   :  { %642 = vmatpush1.bf16.msra.mxu1 %v2600_v57 }
 0x16b   :  { %643 = vmatprep.subr.bf16.mxu1 %v2608_v59 }
 0x16e   :  { %644 = vmatpush1.bf16.msra.mxu1 %v2610_v60 }
 0x16f   :  { %1856 = vmatprep.subr.bf16.mxu1 %v3246_v26 }
 0x224   :  { %v449_v63 = vpop.f32.mrb[0].mxu1 }
 0x225   :  { %v678_v1 = vadd.f32 %v449_v63, %v223_v61  ;;  %v451_v2 = vpop.f32.mrb[1].mxu1  ;;  %v271_v61 = vlaneseq }
 0x226   :  { %v457_v3 = vadd.f32 %v2623_v62, %v451_v2  ;;  %v453_v4 = vpop.f32.mrb[2].mxu1  ;;  %v269_v2 = vld [vmem:[%s3243_s8] sm:$0x3] }
 0x227   :  { %2059 = vtanh.f32 %v678_v1  ;;  %v454_v5 = vpop.f32.mrb[3].mxu1  ;;  %v272_v63 = vshrl.u32 %v271_v61, 7 }
 0x228   :  { %2061 = vtanh.f32 %v457_v3 }
 0x229   :  { %v273_v1 = vsub.s32 0, %v272_v63  ;;  %v277_v3 = vsub.s32 1, %v272_v63  ;;  %v228_v63 = vadd.f32 %v2531_v31, %v2529_v30 }
 0x22b   :  { %v2707_v4 = vrot.slane %v269_v2, %v273_v1  ;;  %v2709_v5 = vrot.slane %v269_v2, %v277_v3 }
 0x22d   :  { %3265 = vst [vmem:[#allocation27_spill] sm:$0xff] %v2707_v4 }
 0x231   :  { %v2060_v8 = vpop.eup %2059 }
 0x232   :  { %v2630_v32 = vpop.eup %2061  ;;  %v2634_v33 = vsel %vm675_vm4, %v2060_v8, %v333_v12 }
 0x233   :  { %v1707_v35 = vpack.c.bf16 %v2630_v32, %v2630_v32  ;;  %v681_v37 = vpack.c.bf16 %v2634_v33, %v2634_v33 }
 0x235   :  { %1853 = vmatmul.mubr.msk.bf16.vlgmr.msra.gmra.mrb[8].mxu0 %vm2544_vm2, %v1707_v35  ;;  %1727 = vmatmul.mubr.msk.bf16.vlgmr.msra.gmra.mrb[4].mxu1 %vm2544_vm2, %v1707_v35 }
 0x236   :  { %683 = vmatpush1.bf16.msra.mxu0 %v2459_v7  ;;  %714 = vmatprep.mubr.bf16.mxu0 %v3248_v0 }
 0x237   :  { %684 = vmatprep.subr.bf16.mxu0 %v2461_v9  ;;  %1857 = vmatpush3.bf16.msra.mxu1 %v2506_v24 }
 0x238   :  { %1858 = vmatprep.subr.bf16.mxu1 %v3246_v26  ;;  %1872 = vmatprep.mubr.msk.bf16.mxu1 %vm2302_vm3, %v3246_v26 }
 0x23a   :  { %685 = vmatpush1.bf16.msra.mxu0 %v2465_v10 }
 0x23b   :  { %686 = vmatprep.subr.bf16.mxu0 %v2468_v11  ;;  %1859 = vmatpush3.bf16.msra.mxu1 %v2513_v27 }
 0x23c   :  { %1860 = vmatprep.subr.bf16.mxu1 %v3246_v26 }
 0x23e   :  { %687 = vmatpush1.bf16.msra.mxu0 %v2470_v13 }
 0x23f   :  { %688 = vmatprep.subr.bf16.mxu0 %v2472_v14  ;;  %1861 = vmatpush3.bf16.msra.mxu1 %v2517_v28 }
 0x240   :  { %1862 = vmatprep.subr.bf16.mxu1 %v3246_v26 }
 0x242   :  { %689 = vmatpush1.bf16.msra.mxu0 %v2476_v15 }
 0x243   :  { %690 = vmatprep.subr.bf16.mxu0 %v2482_v16  ;;  %1863 = vmatpush3.bf16.msra.mxu1 %v2521_v29 }
 0x244   :  { %1864 = vmatprep.subr.bf16.mxu1 %v3246_v26 }
 0x246   :  { %691 = vmatpush1.bf16.msra.mxu0 %v2484_v17 }
 0x247   :  { %692 = vmatprep.subr.bf16.mxu0 %v2488_v18  ;;  %1865 = vmatpush3.bf16.msra.mxu1 %v2574_v47 }
 0x248   :  { %1866 = vmatprep.subr.bf16.mxu1 %v3246_v26 }
 0x24a   :  { %693 = vmatpush1.bf16.msra.mxu0 %v2490_v19 }
 0x24b   :  { %694 = vmatprep.subr.bf16.mxu0 %v2492_v20  ;;  %1867 = vmatpush3.bf16.msra.mxu1 %v2584_v51 }
 0x24c   :  { %1868 = vmatprep.subr.bf16.mxu1 %v3246_v26 }
 0x24e   :  { %695 = vmatpush1.bf16.msra.mxu0 %v2496_v21 }
 0x24f   :  { %696 = vmatprep.subr.bf16.mxu0 %v2499_v22  ;;  %1869 = vmatpush3.bf16.msra.mxu1 %v2596_v55 }
 0x250   :  { %1870 = vmatprep.subr.bf16.mxu1 %v3246_v26 }
 0x252   :  { %697 = vmatpush1.bf16.msra.mxu0 %v2502_v23 }
 0x253   :  { %770 = vmatprep.subr.bf16.mxu0 %v2508_v25  ;;  %1871 = vmatpush3.bf16.msra.mxu1 %v2606_v58 }
 0x254   :  { %823 = vmatprep.subr.bf16.mxu1 %v2457_v6 }
 0x255   :  { %715 = vmatmul.mubr.bf16.vlgmr.msra.gmra.mrb[12].mxu0 %v681_v37 }
 0x256   :  { %771 = vmatpush1.bf16.msra.mxu0 %v2548_v39  ;;  %802 = vmatprep.mubr.bf16.mxu0 %v3248_v0 }
 0x257   :  { %772 = vmatprep.subr.bf16.mxu0 %v2552_v41 }
 0x25a   :  { %773 = vmatpush1.bf16.msra.mxu0 %v2557_v42 }
 0x25b   :  { %774 = vmatprep.subr.bf16.mxu0 %v2561_v43 }
 0x25e   :  { %775 = vmatpush1.bf16.msra.mxu0 %v2564_v44 }
 0x25f   :  { %776 = vmatprep.subr.bf16.mxu0 %v2567_v45 }
 0x262   :  { %777 = vmatpush1.bf16.msra.mxu0 %v2570_v46 }
 0x263   :  { %778 = vmatprep.subr.bf16.mxu0 %v2576_v48 }
 0x266   :  { %779 = vmatpush1.bf16.msra.mxu0 %v2578_v49 }
 0x267   :  { %780 = vmatprep.subr.bf16.mxu0 %v2586_v52 }
 0x26a   :  { %781 = vmatpush1.bf16.msra.mxu0 %v2588_v54 }
 0x26b   :  { %782 = vmatprep.subr.bf16.mxu0 %v2598_v56 }
 0x26e   :  { %783 = vmatpush1.bf16.msra.mxu0 %v2600_v57 }
 0x26f   :  { %784 = vmatprep.subr.bf16.mxu0 %v2608_v59 }
 0x272   :  { %785 = vmatpush1.bf16.msra.mxu0 %v2610_v60 }
 0x273   :  { %1876 = vmatprep.subr.bf16.mxu0 %v3246_v26 }
 0x308   :  { %v543_v8 = vpop.f32.mrb[8].mxu0  ;;  %v663_v12 = vpop.f32.mrb[4].mxu1 }
 0x309   :  { %v664_v35 = vadd.f32 %v663_v12, %v2707_v4  ;;  %v1854_v37 = vpop.f32.mrb[9].mxu0  ;;  %v665_v26 = vpop.f32.mrb[5].mxu1 }
 0x30a   :  { %v666_v0 = vadd.f32 %v665_v26, %v2709_v5  ;;  %v546_v50 = vpop.f32.mrb[10].mxu0  ;;  %v667_v61 = vpop.f32.mrb[6].mxu1  ;;  %v459_v26 = vsel %vm329_vm1, %v2630_v32, 0.0  ;;  %vm1746_vm1 = vmpackc.low %vm1521_vm15, %vm1521_vm15 }
 0x30b   :  { %673 = vst [vmem:[#allocation12] sm:$0xff] %v664_v35  ;;  %v1855_v38 = vpop.f32.mrb[11].mxu0  ;;  %v668_v53 = vpop.f32.mrb[7].mxu1 }
 0x30c   :  { %674 = vst [vmem:[#allocation12 + $0x8] sm:$0xff] %v666_v0 }
 0x328   :  { %v716_v1 = vpop.f32.mrb[12].mxu0 }
 0x329   :  { %v819_v2 = vadd.f32 %v716_v1, %v228_v63  ;;  %v718_v3 = vpop.f32.mrb[13].mxu0 }
 0x32a   :  { %v723_v40 = vadd.f32 %v718_v3, %v543_v8  ;;  %v720_v34 = vpop.f32.mrb[14].mxu0 }
 0x32b   :  { %v721_v60 = vpop.f32.mrb[15].mxu0  ;;  %v3266_v34 = vmov 0  }
 0x32c   :  { %v724_v12 = vadd.f32 %v2623_v62, %v723_v40  ;;  %v3267_v60 = vmov 0.0  }
 0x32e   :  { %2063 = vtanh.f32 %v724_v12 }
 0x32f   :  { %2065 = vtanh.f32 %v819_v2 }
 0x338   :  { %v2064_v37 = vpop.eup %2063 }
 0x339   :  { %v1729_v38 = vpack.c.bf16 %v2064_v37, %v2064_v37  ;;  %v2721_v0 = vsel %vm675_vm4, %v2064_v37, %v459_v26  ;;  %v2066_v32 = vpop.eup %2065  ;;  %v3269_v26 = vld [vmem:[#allocation20_spill] sm:$0xff] }
 0x33a   :  { %v727_v31 = vpack.c.bf16 %v2721_v0, %v2721_v0  ;;  %v2763_v40 = vsel %vm816_vm6, %v2066_v32, %v2634_v33  ;;  %v3268_v33 = vld [vmem:[#allocation22_spill] sm:$0xff] }
 0x33b   :  { %1730 = vmatmul.mubr.msk.bf16.vlgmr.msra.gmra.mrb[16].mxu0 %vm1728_vm5, %v1729_v38  ;;  %v822_v50 = vpack.c.bf16 %v2763_v40, %v2763_v40  ;;  %v231_v38 = vadd.f32 %v3269_v26, %v2529_v30 }
 0x33c   :  { %1873 = vmatmul.mubr.bf16.vlgmr.msra.gmra.mrb[8].mxu1 %v727_v31  ;;  %1877 = vmatpush3.bf16.msra.mxu0 %v2506_v24 }
 0x33d   :  { %824 = vmatpush1.bf16.msra.mxu1 %v2459_v7  ;;  %855 = vmatprep.mubr.bf16.mxu1 %v3266_v34 }
 0x33e   :  { %825 = vmatprep.subr.bf16.mxu1 %v2461_v9  ;;  %1878 = vmatprep.subr.bf16.mxu0 %v3267_v60 }
 0x33f   :  { %1892 = vmatprep.mubr.msk.bf16.mxu0 %vm2302_vm3, %v3267_v60 }
 0x340   :  { %1879 = vmatpush3.bf16.msra.mxu0 %v2513_v27 }
 0x341   :  { %826 = vmatpush1.bf16.msra.mxu1 %v2465_v10  ;;  %1880 = vmatprep.subr.bf16.mxu0 %v3267_v60 }
 0x342   :  { %827 = vmatprep.subr.bf16.mxu1 %v2468_v11 }
 0x344   :  { %1881 = vmatpush3.bf16.msra.mxu0 %v2517_v28 }
 0x345   :  { %828 = vmatpush1.bf16.msra.mxu1 %v2470_v13  ;;  %1882 = vmatprep.subr.bf16.mxu0 %v3267_v60 }
 0x346   :  { %829 = vmatprep.subr.bf16.mxu1 %v2472_v14 }
 0x348   :  { %1883 = vmatpush3.bf16.msra.mxu0 %v2521_v29 }
 0x349   :  { %830 = vmatpush1.bf16.msra.mxu1 %v2476_v15  ;;  %1884 = vmatprep.subr.bf16.mxu0 %v3267_v60 }
 0x34a   :  { %831 = vmatprep.subr.bf16.mxu1 %v2482_v16 }
 0x34c   :  { %1885 = vmatpush3.bf16.msra.mxu0 %v2574_v47 }
 0x34d   :  { %832 = vmatpush1.bf16.msra.mxu1 %v2484_v17  ;;  %1886 = vmatprep.subr.bf16.mxu0 %v3267_v60 }
 0x34e   :  { %833 = vmatprep.subr.bf16.mxu1 %v2488_v18 }
 0x350   :  { %1887 = vmatpush3.bf16.msra.mxu0 %v2584_v51 }
 0x351   :  { %834 = vmatpush1.bf16.msra.mxu1 %v2490_v19  ;;  %1888 = vmatprep.subr.bf16.mxu0 %v3267_v60 }
 0x352   :  { %835 = vmatprep.subr.bf16.mxu1 %v2492_v20 }
 0x354   :  { %1889 = vmatpush3.bf16.msra.mxu0 %v2596_v55 }
 0x355   :  { %836 = vmatpush1.bf16.msra.mxu1 %v2496_v21  ;;  %1890 = vmatprep.subr.bf16.mxu0 %v3267_v60 }
 0x356   :  { %837 = vmatprep.subr.bf16.mxu1 %v2499_v22 }
 0x358   :  { %1891 = vmatpush3.bf16.msra.mxu0 %v2606_v58 }
 0x359   :  { %838 = vmatpush1.bf16.msra.mxu1 %v2502_v23  ;;  %964 = vmatprep.subr.bf16.mxu0 %v2457_v6 }
 0x35a   :  { %911 = vmatprep.subr.bf16.mxu1 %v2508_v25 }
 0x35c   :  { %856 = vmatmul.mubr.bf16.vlgmr.msra.gmra.mrb[12].mxu1 %v822_v50 }
 0x35d   :  { %912 = vmatpush1.bf16.msra.mxu1 %v2548_v39  ;;  %943 = vmatprep.mubr.bf16.mxu1 %v3266_v34 }
 0x35e   :  { %913 = vmatprep.subr.bf16.mxu1 %v2552_v41 }
 0x361   :  { %914 = vmatpush1.bf16.msra.mxu1 %v2557_v42 }
 0x362   :  { %915 = vmatprep.subr.bf16.mxu1 %v2561_v43 }
 0x365   :  { %916 = vmatpush1.bf16.msra.mxu1 %v2564_v44 }
 0x366   :  { %917 = vmatprep.subr.bf16.mxu1 %v2567_v45 }
 0x369   :  { %918 = vmatpush1.bf16.msra.mxu1 %v2570_v46 }
 0x36a   :  { %919 = vmatprep.subr.bf16.mxu1 %v2576_v48 }
 0x36d   :  { %920 = vmatpush1.bf16.msra.mxu1 %v2578_v49 }
 0x36e   :  { %921 = vmatprep.subr.bf16.mxu1 %v2586_v52 }
 0x371   :  { %922 = vmatpush1.bf16.msra.mxu1 %v2588_v54 }
 0x372   :  { %923 = vmatprep.subr.bf16.mxu1 %v2598_v56 }
 0x375   :  { %924 = vmatpush1.bf16.msra.mxu1 %v2600_v57 }
 0x376   :  { %925 = vmatprep.subr.bf16.mxu1 %v2608_v59 }
 0x379   :  { %926 = vmatpush1.bf16.msra.mxu1 %v3268_v33 }
 0x37a   :  { %1896 = vmatprep.subr.bf16.mxu1 %v3267_v60 }
 0x40e   :  { %v804_v53 = vpop.f32.mrb[16].mxu0 }
 0x40f   :  { %v805_v8 = vadd.f32 %v804_v53, %v2707_v4  ;;  %v762_v35 = vpop.f32.mrb[8].mxu1  ;;  %v806_v61 = vpop.f32.mrb[17].mxu0 }
 0x410   :  { %v807_v63 = vadd.f32 %v806_v61, %v2709_v5  ;;  %v1874_v1 = vpop.f32.mrb[9].mxu1  ;;  %v808_v2 = vpop.f32.mrb[18].mxu0 }
 0x411   :  { %814 = vst [vmem:[#allocation12 + $0x10] sm:$0xff] %v805_v8  ;;  %v765_v3 = vpop.f32.mrb[10].mxu1  ;;  %v809_v12 = vpop.f32.mrb[19].mxu0  ;;  %v3272_v2 = vld [vmem:[#allocation27_spill] sm:$0xff] }
 0x412   :  { %815 = vst [vmem:[#allocation12 + $0x18] sm:$0xff] %v807_v63  ;;  %v1875_v37 = vpop.f32.mrb[11].mxu1 }
 0x42f   :  { %v857_v31 = vpop.f32.mrb[12].mxu1 }
 0x430   :  { %v960_v32 = vadd.f32 %v857_v31, %v231_v38  ;;  %v859_v50 = vpop.f32.mrb[13].mxu1 }
 0x431   :  { %v864_v33 = vadd.f32 %v859_v50, %v762_v35  ;;  %v861_v59 = vpop.f32.mrb[14].mxu1 }
 0x432   :  { %v862_v53 = vpop.f32.mrb[15].mxu1 }
 0x433   :  { %v865_v4 = vadd.f32 %v2623_v62, %v864_v33  ;;  %v3271_v33 = vld [vmem:[#allocation22_spill] sm:$0xff] }
 0x435   :  { %2067 = vtanh.f32 %v865_v4 }
 0x436   :  { %2069 = vtanh.f32 %v960_v32 }
 0x43f   :  { %v2068_v61 = vpop.eup %2067 }
 0x440   :  { %v1732_v1 = vpack.c.bf16 %v2068_v61, %v2068_v61  ;;  %v2796_v8 = vsel %vm816_vm6, %v2068_v61, %v2721_v0  ;;  %v2070_v59 = vpop.eup %2069  ;;  %v3273_v61 = vld [vmem:[#allocation24_spill] sm:$0xff] }
 0x441   :  { %v868_v63 = vpack.c.bf16 %v2796_v8, %v2796_v8  ;;  %v2838_v4 = vsel %vm957_vm8, %v2070_v59, %v2763_v40  ;;  %v3270_v40 = vld [vmem:[#allocation21_spill] sm:$0xff] }
 0x442   :  { %1733 = vmatmul.mubr.msk.bf16.vlgmr.msra.gmra.mrb[16].mxu1 %vm1731_vm7, %v1732_v1  ;;  %v963_v0 = vpack.c.bf16 %v2838_v4, %v2838_v4  ;;  %v236_v1 = vadd.f32 %v2529_v30, %v3273_v61 }
 0x443   :  { %1893 = vmatmul.mubr.bf16.vlgmr.msra.gmra.mrb[20].mxu0 %v868_v63  ;;  %1897 = vmatpush3.bf16.msra.mxu1 %v2506_v24 }
 0x444   :  { %965 = vmatpush1.bf16.msra.mxu0 %v2459_v7  ;;  %996 = vmatprep.mubr.bf16.mxu0 %v3266_v34 }
 0x445   :  { %966 = vmatprep.subr.bf16.mxu0 %v2461_v9  ;;  %1898 = vmatprep.subr.bf16.mxu1 %v3267_v60 }
 0x446   :  { %1912 = vmatprep.mubr.msk.bf16.mxu1 %vm2302_vm3, %v3267_v60 }
 0x447   :  { %1899 = vmatpush3.bf16.msra.mxu1 %v2513_v27 }
 0x448   :  { %967 = vmatpush1.bf16.msra.mxu0 %v2465_v10  ;;  %1900 = vmatprep.subr.bf16.mxu1 %v3267_v60 }
 0x449   :  { %968 = vmatprep.subr.bf16.mxu0 %v2468_v11 }
 0x44b   :  { %1901 = vmatpush3.bf16.msra.mxu1 %v2517_v28 }
 0x44c   :  { %969 = vmatpush1.bf16.msra.mxu0 %v2470_v13  ;;  %1902 = vmatprep.subr.bf16.mxu1 %v3267_v60 }
 0x44d   :  { %970 = vmatprep.subr.bf16.mxu0 %v2472_v14 }
 0x44f   :  { %1903 = vmatpush3.bf16.msra.mxu1 %v2521_v29 }
 0x450   :  { %971 = vmatpush1.bf16.msra.mxu0 %v2476_v15  ;;  %1904 = vmatprep.subr.bf16.mxu1 %v3267_v60 }
 0x451   :  { %972 = vmatprep.subr.bf16.mxu0 %v2482_v16 }
 0x453   :  { %1905 = vmatpush3.bf16.msra.mxu1 %v2574_v47 }
 0x454   :  { %973 = vmatpush1.bf16.msra.mxu0 %v2484_v17  ;;  %1906 = vmatprep.subr.bf16.mxu1 %v3267_v60 }
 0x455   :  { %974 = vmatprep.subr.bf16.mxu0 %v2488_v18 }
 0x457   :  { %1907 = vmatpush3.bf16.msra.mxu1 %v2584_v51 }
 0x458   :  { %975 = vmatpush1.bf16.msra.mxu0 %v2490_v19  ;;  %1908 = vmatprep.subr.bf16.mxu1 %v3267_v60 }
 0x459   :  { %976 = vmatprep.subr.bf16.mxu0 %v2492_v20 }
 0x45b   :  { %1909 = vmatpush3.bf16.msra.mxu1 %v2596_v55 }
 0x45c   :  { %977 = vmatpush1.bf16.msra.mxu0 %v2496_v21  ;;  %1910 = vmatprep.subr.bf16.mxu1 %v3267_v60 }
 0x45d   :  { %978 = vmatprep.subr.bf16.mxu0 %v2499_v22 }
 0x45f   :  { %1911 = vmatpush3.bf16.msra.mxu1 %v2606_v58 }
 0x460   :  { %979 = vmatpush1.bf16.msra.mxu0 %v2502_v23  ;;  %1105 = vmatprep.subr.bf16.mxu1 %v2457_v6 }
 0x461   :  { %1052 = vmatprep.subr.bf16.mxu0 %v2508_v25 }
 0x463   :  { %997 = vmatmul.mubr.bf16.vlgmr.msra.gmra.mrb[24].mxu0 %v963_v0 }
 0x464   :  { %1053 = vmatpush1.bf16.msra.mxu0 %v2548_v39  ;;  %1084 = vmatprep.mubr.bf16.mxu0 %v3266_v34 }
 0x465   :  { %1054 = vmatprep.subr.bf16.mxu0 %v2552_v41 }
 0x468   :  { %1055 = vmatpush1.bf16.msra.mxu0 %v2557_v42 }
 0x469   :  { %1056 = vmatprep.subr.bf16.mxu0 %v2561_v43 }
 0x46c   :  { %1057 = vmatpush1.bf16.msra.mxu0 %v2564_v44 }
 0x46d   :  { %1058 = vmatprep.subr.bf16.mxu0 %v2567_v45 }
 0x470   :  { %1059 = vmatpush1.bf16.msra.mxu0 %v2570_v46 }
 0x471   :  { %1060 = vmatprep.subr.bf16.mxu0 %v2576_v48 }
 0x474   :  { %1061 = vmatpush1.bf16.msra.mxu0 %v2578_v49 }
 0x475   :  { %1062 = vmatprep.subr.bf16.mxu0 %v2586_v52 }
 0x478   :  { %1063 = vmatpush1.bf16.msra.mxu0 %v2588_v54 }
 0x479   :  { %1064 = vmatprep.subr.bf16.mxu0 %v2598_v56 }
 0x47c   :  { %1065 = vmatpush1.bf16.msra.mxu0 %v2600_v57 }
 0x47d   :  { %1066 = vmatprep.subr.bf16.mxu0 %v3270_v40 }
 0x480   :  { %1067 = vmatpush1.bf16.msra.mxu0 %v3271_v33 }
 0x481   :  { %1916 = vmatprep.subr.bf16.mxu0 %v3267_v60 }
 0x515   :  { %v945_v35 = vpop.f32.mrb[16].mxu1 }
 0x516   :  { %v946_v3 = vadd.f32 %v945_v35, %v3272_v2  ;;  %v903_v12 = vpop.f32.mrb[20].mxu0  ;;  %v947_v37 = vpop.f32.mrb[17].mxu1 }
 0x517   :  { %v948_v26 = vadd.f32 %v947_v37, %v2709_v5  ;;  %v1894_v38 = vpop.f32.mrb[21].mxu0  ;;  %v949_v31 = vpop.f32.mrb[18].mxu1 }
 0x518   :  { %955 = vst [vmem:[#allocation12 + $0x20] sm:$0xff] %v946_v3  ;;  %v906_v32 = vpop.f32.mrb[22].mxu0  ;;  %v950_v50 = vpop.f32.mrb[19].mxu1 }
 0x519   :  { %956 = vst [vmem:[#allocation12 + $0x28] sm:$0xff] %v948_v26  ;;  %v1895_v53 = vpop.f32.mrb[23].mxu0  ;;  %v3277_v50 = vld [vmem:[#allocation26_spill] sm:$0xff] }
 0x51a   :  { %v239_v53 = vadd.f32 %v2529_v30, %v3277_v50  ;;  %v3074_v50 = vld [vmem:[#allocation8 + $0x64] ss:$8 sps:$4 sm:$0xff]  }
 0x536   :  { %v998_v63 = vpop.f32.mrb[24].mxu0 }
 0x537   :  { %v1101_v59 = vadd.f32 %v998_v63, %v236_v1  ;;  %v1000_v0 = vpop.f32.mrb[25].mxu0 }
 0x538   :  { %v1005_v33 = vadd.f32 %v1000_v0, %v903_v12  ;;  %v1002_v40 = vpop.f32.mrb[26].mxu0 }
 0x539   :  { %v1003_v35 = vpop.f32.mrb[27].mxu0 }
 0x53a   :  { %v1006_v2 = vadd.f32 %v2623_v62, %v1005_v33 }
 0x53c   :  { %2071 = vtanh.f32 %v1006_v2 }
 0x53d   :  { %2073 = vtanh.f32 %v1101_v59 }
 0x546   :  { %v2072_v37 = vpop.eup %2071 }
 0x547   :  { %v1735_v38 = vpack.c.bf16 %v2072_v37, %v2072_v37  ;;  %v2871_v3 = vsel %vm957_vm8, %v2072_v37, %v2796_v8 }
 0x548   :  { %v1009_v26 = vpack.c.bf16 %v2871_v3, %v2871_v3 }
 0x549   :  { %1736 = vmatmul.mubr.msk.bf16.vlgmr.msra.gmra.mrb[28].mxu0 %vm1734_vm9, %v1735_v38 }
 0x54a   :  { %1913 = vmatmul.mubr.bf16.vlgmr.msra.gmra.mrb[20].mxu1 %v1009_v26  ;;  %1917 = vmatpush3.bf16.msra.mxu0 %v2506_v24 }
 0x54b   :  { %1106 = vmatpush1.bf16.msra.mxu1 %v2459_v7  ;;  %1137 = vmatprep.mubr.bf16.mxu1 %v3266_v34  ;;  %v2074_v7 = vpop.eup %2073 }
 0x54c   :  { %1107 = vmatprep.subr.bf16.mxu1 %v2461_v9  ;;  %1918 = vmatprep.subr.bf16.mxu0 %v3267_v60  ;;  %v2913_v9 = vsel %vm1098_vm10, %v2074_v7, %v2838_v4 }
 0x54d   :  { %1932 = vmatprep.mubr.msk.bf16.mxu0 %vm2302_vm3, %v3267_v60 }
 0x54e   :  { %1919 = vmatpush3.bf16.msra.mxu0 %v2513_v27 }
 0x54f   :  { %1108 = vmatpush1.bf16.msra.mxu1 %v2465_v10  ;;  %1920 = vmatprep.subr.bf16.mxu0 %v3267_v60  ;;  %v1104_v10 = vpack.c.bf16 %v2913_v9, %v2913_v9 }
 0x550   :  { %1109 = vmatprep.subr.bf16.mxu1 %v2468_v11  ;;  %v3275_v11 = vld [vmem:[#allocation22_spill] sm:$0xff] }
 0x552   :  { %1921 = vmatpush3.bf16.msra.mxu0 %v2517_v28 }
 0x553   :  { %1110 = vmatpush1.bf16.msra.mxu1 %v2470_v13  ;;  %1922 = vmatprep.subr.bf16.mxu0 %v3267_v60 }
 0x554   :  { %1111 = vmatprep.subr.bf16.mxu1 %v2472_v14  ;;  %v3276_v14 = vld [vmem:[#allocation27_spill] sm:$0xff] }
 0x556   :  { %1923 = vmatpush3.bf16.msra.mxu0 %v2521_v29 }
 0x557   :  { %1112 = vmatpush1.bf16.msra.mxu1 %v2476_v15  ;;  %1924 = vmatprep.subr.bf16.mxu0 %v3267_v60 }
 0x558   :  { %1113 = vmatprep.subr.bf16.mxu1 %v2482_v16 }
 0x55a   :  { %1925 = vmatpush3.bf16.msra.mxu0 %v2574_v47 }
 0x55b   :  { %1114 = vmatpush1.bf16.msra.mxu1 %v2484_v17  ;;  %1926 = vmatprep.subr.bf16.mxu0 %v3267_v60 }
 0x55c   :  { %1115 = vmatprep.subr.bf16.mxu1 %v2488_v18 }
 0x55e   :  { %1927 = vmatpush3.bf16.msra.mxu0 %v2584_v51 }
 0x55f   :  { %1116 = vmatpush1.bf16.msra.mxu1 %v2490_v19  ;;  %1928 = vmatprep.subr.bf16.mxu0 %v3267_v60 }
 0x560   :  { %1117 = vmatprep.subr.bf16.mxu1 %v2492_v20 }
 0x562   :  { %1929 = vmatpush3.bf16.msra.mxu0 %v2596_v55 }
 0x563   :  { %1118 = vmatpush1.bf16.msra.mxu1 %v2496_v21  ;;  %1930 = vmatprep.subr.bf16.mxu0 %v3267_v60 }
 0x564   :  { %1119 = vmatprep.subr.bf16.mxu1 %v2499_v22 }
 0x566   :  { %1931 = vmatpush3.bf16.msra.mxu0 %v2606_v58 }
 0x567   :  { %1120 = vmatpush1.bf16.msra.mxu1 %v2502_v23  ;;  %1246 = vmatprep.subr.bf16.mxu0 %v2457_v6  ;;  %v3274_v6 = vld [vmem:[#allocation21_spill] sm:$0xff] }
 0x568   :  { %1193 = vmatprep.subr.bf16.mxu1 %v2508_v25 }
 0x56a   :  { %1138 = vmatmul.mubr.bf16.vlgmr.msra.gmra.mrb[24].mxu1 %v1104_v10 }
 0x56b   :  { %1194 = vmatpush1.bf16.msra.mxu1 %v2548_v39  ;;  %1225 = vmatprep.mubr.bf16.mxu1 %v3266_v34 }
 0x56c   :  { %1195 = vmatprep.subr.bf16.mxu1 %v2552_v41 }
 0x56f   :  { %1196 = vmatpush1.bf16.msra.mxu1 %v2557_v42 }
 0x570   :  { %1197 = vmatprep.subr.bf16.mxu1 %v2561_v43 }
 0x573   :  { %1198 = vmatpush1.bf16.msra.mxu1 %v2564_v44 }
 0x574   :  { %1199 = vmatprep.subr.bf16.mxu1 %v2567_v45 }
 0x577   :  { %1200 = vmatpush1.bf16.msra.mxu1 %v2570_v46 }
 0x578   :  { %1201 = vmatprep.subr.bf16.mxu1 %v2576_v48 }
 0x57b   :  { %1202 = vmatpush1.bf16.msra.mxu1 %v2578_v49 }
 0x57c   :  { %1203 = vmatprep.subr.bf16.mxu1 %v2586_v52 }
 0x57f   :  { %1204 = vmatpush1.bf16.msra.mxu1 %v2588_v54 }
 0x580   :  { %1205 = vmatprep.subr.bf16.mxu1 %v2598_v56 }
 0x583   :  { %1206 = vmatpush1.bf16.msra.mxu1 %v2600_v57 }
 0x584   :  { %1207 = vmatprep.subr.bf16.mxu1 %v3274_v6 }
 0x587   :  { %1208 = vmatpush1.bf16.msra.mxu1 %v3275_v11 }
 0x588   :  { %1936 = vmatprep.subr.bf16.mxu1 %v3267_v60 }
 0x61c   :  { %v1086_v13 = vpop.f32.mrb[28].mxu0 }
 0x61d   :  { %v1087_v15 = vadd.f32 %v1086_v13, %v3276_v14  ;;  %v1044_v8 = vpop.f32.mrb[20].mxu1  ;;  %v1088_v4 = vpop.f32.mrb[29].mxu0  ;;  %v2954_v13 = vld [vmem:[#allocation8] ss:$8 sps:$4 sm:$0xff]  }
 0x61e   :  { %v1089_v40 = vadd.f32 %v1088_v4, %v2709_v5  ;;  %v1914_v33 = vpop.f32.mrb[21].mxu1  ;;  %v1090_v2 = vpop.f32.mrb[30].mxu0  ;;  %v2977_v4 = vld [vmem:[#allocation8 + $0x34] ss:$8 sps:$4 sm:$0xff]  }
 0x61f   :  { %1096 = vst [vmem:[#allocation12 + $0x30] sm:$0xff] %v1087_v15  ;;  %v1047_v12 = vpop.f32.mrb[22].mxu1  ;;  %v1091_v31 = vpop.f32.mrb[31].mxu0  ;;  %v2958_v15 = vld [vmem:[#allocation8 + $0x14] ss:$8 sps:$4 sm:$0xff]  }
 0x620   :  { %1097 = vst [vmem:[#allocation12 + $0x38] sm:$0xff] %v1089_v40  ;;  %v1915_v32 = vpop.f32.mrb[23].mxu1  ;;  %v2099_v40 = vld [vmem:[#allocation9 + $0x10] sm:$0xff]   ;;  %v2100_v33 = vld [vmem:[#allocation9 + $0x18] sm:$0xff]   ;;  %v3058_v2 = vld [vmem:[#allocation8 + $0x44] ss:$8 sps:$4 sm:$0xff]  }
 0x621   :  { %v3062_v12 = vld [vmem:[#allocation8 + $0x40] ss:$8 sps:$4 sm:$0xff]   ;;  %v3066_v31 = vld [vmem:[#allocation8 + $0x54] ss:$8 sps:$4 sm:$0xff]   ;;  %v3070_v32 = vld [vmem:[#allocation8 + $0x50] ss:$8 sps:$4 sm:$0xff]  }
 0x63d   :  { %v1139_v61 = vpop.f32.mrb[24].mxu1 }
 0x63e   :  { %v1242_v1 = vadd.f32 %v1139_v61, %v239_v53  ;;  %v1141_v63 = vpop.f32.mrb[25].mxu1  ;;  %v3078_v53 = vld [vmem:[#allocation8 + $0x60] ss:$8 sps:$4 sm:$0xff]  }
 0x63f   :  { %v1146_v59 = vadd.f32 %v1141_v63, %v1044_v8  ;;  %v1143_v0 = vpop.f32.mrb[26].mxu1  ;;  %v2973_v8 = vld [vmem:[#allocation8 + $0x20] ss:$8 sps:$4 sm:$0xff]  }
 0x640   :  { %v1144_v35 = vpop.f32.mrb[27].mxu1  ;;  %v3098_v63 = vld [vmem:[#allocation11] ss:$8 sps:$4 sm:$0xff]   ;;  %v3108_v0 = vld [vmem:[#allocation11 + $0x24] ss:$8 sps:$4 sm:$0xff]  }
 0x641   :  { %v1147_v37 = vadd.f32 %v2623_v62, %v1146_v59  ;;  %v3102_v59 = vld [vmem:[#allocation11 + $0x14] ss:$8 sps:$4 sm:$0xff]   ;;  %v3111_v35 = vld [vmem:[#allocation11 + $0x20] ss:$8 sps:$4 sm:$0xff]  }
 0x643   :  { %2075 = vtanh.f32 %v1147_v37  ;;  %v3114_v37 = vld [vmem:[#allocation11 + $0x34] ss:$8 sps:$4 sm:$0xff]  }
 0x644   :  { %2077 = vtanh.f32 %v1242_v1  ;;  %v2109_v1 = vld [vmem:[#allocation11 + $0x4] ss:$8 sps:$4 sm:$0xff]  }
 0x64d   :  { %v2076_v38 = vpop.eup %2075 }
 0x64e   :  { %v1738_v26 = vpack.c.bf16 %v2076_v38, %v2076_v38  ;;  %v2946_v7 = vsel %vm1098_vm10, %v2076_v38, %v2871_v3  ;;  %v2965_v3 = vld [vmem:[#allocation8 + $0x10] ss:$8 sps:$4 sm:$0xff]  }
 0x64f   :  { %v1150_v10 = vpack.c.bf16 %v2946_v7, %v2946_v7  ;;  %v3117_v38 = vld [vmem:[#allocation11 + $0x30] ss:$8 sps:$4 sm:$0xff]  }
 0x650   :  { %1739 = vmatmul.mubr.msk.bf16.vlgmr.msra.gmra.mrb[28].mxu1 %vm1737_vm11, %v1738_v26  ;;  %v3120_v26 = vld [vmem:[#allocation11 + $0x44] ss:$8 sps:$4 sm:$0xff]  }
 0x651   :  { %1933 = vmatmul.mubr.bf16.vlgmr.msra.gmra.mrb[32].mxu0 %v1150_v10  ;;  %1937 = vmatpush3.bf16.msra.mxu1 %v2506_v24  ;;  %v2969_v24 = vld [vmem:[#allocation8 + $0x24] ss:$8 sps:$4 sm:$0xff]   ;;  %v3126_v10 = vld [vmem:[#allocation11 + $0x54] ss:$8 sps:$4 sm:$0xff]  }
 0x652   :  { %1247 = vmatpush1.bf16.msra.mxu0 %v2954_v13  ;;  %1278 = vmatprep.mubr.bf16.mxu0 %v3266_v34 }
 0x653   :  { %1248 = vmatprep.subr.bf16.mxu0 %v2958_v15  ;;  %1938 = vmatprep.subr.bf16.mxu1 %v3267_v60 }
 0x654   :  { %1952 = vmatprep.mubr.msk.bf16.mxu1 %vm2302_vm3, %v3267_v60 }
 0x655   :  { %1939 = vmatpush3.bf16.msra.mxu1 %v2513_v27  ;;  %v2981_v27 = vld [vmem:[#allocation8 + $0x30] ss:$8 sps:$4 sm:$0xff]  }
 0x656   :  { %1249 = vmatpush1.bf16.msra.mxu0 %v2965_v3  ;;  %1940 = vmatprep.subr.bf16.mxu1 %v3267_v60 }
 0x657   :  { %1250 = vmatprep.subr.bf16.mxu0 %v2969_v24 }
 0x659   :  { %1941 = vmatpush3.bf16.msra.mxu1 %v2517_v28  ;;  %v2078_v28 = vpop.eup %2077 }
 0x65a   :  { %1251 = vmatpush1.bf16.msra.mxu0 %v2973_v8  ;;  %1942 = vmatprep.subr.bf16.mxu1 %v3267_v60 }
 0x65b   :  { %1252 = vmatprep.subr.bf16.mxu0 %v2977_v4 }
 0x65d   :  { %1943 = vmatpush3.bf16.msra.mxu1 %v2521_v29 }
 0x65e   :  { %1253 = vmatpush1.bf16.msra.mxu0 %v2981_v27  ;;  %1944 = vmatprep.subr.bf16.mxu1 %v3267_v60 }
 0x65f   :  { %1254 = vmatprep.subr.bf16.mxu0 %v2482_v16  ;;  %v3002_v16 = vsel %vm1239_vm12, %v2078_v28, %v2913_v9  ;;  %v3129_v28 = vld [vmem:[#allocation11 + $0x50] ss:$8 sps:$4 sm:$0xff]  }
 0x661   :  { %1945 = vmatpush3.bf16.msra.mxu1 %v2574_v47 }
 0x662   :  { %1255 = vmatpush1.bf16.msra.mxu0 %v2484_v17  ;;  %1946 = vmatprep.subr.bf16.mxu1 %v3267_v60  ;;  %v3006_v17 = vld [vmem:[#allocation8 + $0x4] ss:$8 sps:$4 sm:$0xff]  }
 0x663   :  { %1256 = vmatprep.subr.bf16.mxu0 %v2488_v18  ;;  %v1245_v18 = vpack.c.bf16 %v3002_v16, %v3002_v16 }
 0x665   :  { %1947 = vmatpush3.bf16.msra.mxu1 %v2584_v51 }
 0x666   :  { %1257 = vmatpush1.bf16.msra.mxu0 %v2490_v19  ;;  %1948 = vmatprep.subr.bf16.mxu1 %v3267_v60 }
 0x667   :  { %1258 = vmatprep.subr.bf16.mxu0 %v2492_v20 }
 0x669   :  { %1949 = vmatpush3.bf16.msra.mxu1 %v2596_v55 }
 0x66a   :  { %1259 = vmatpush1.bf16.msra.mxu0 %v2496_v21  ;;  %1950 = vmatprep.subr.bf16.mxu1 %v3267_v60 }
 0x66b   :  { %1260 = vmatprep.subr.bf16.mxu0 %v2499_v22 }
 0x66d   :  { %1951 = vmatpush3.bf16.msra.mxu1 %v2606_v58 }
 0x66e   :  { %1261 = vmatpush1.bf16.msra.mxu0 %v2502_v23  ;;  %1387 = vmatprep.subr.bf16.mxu1 %v3006_v17 }
 0x66f   :  { %1334 = vmatprep.subr.bf16.mxu0 %v2508_v25 }
 0x671   :  { %1279 = vmatmul.mubr.bf16.vlgmr.msra.gmra.mrb[36].mxu0 %v1245_v18  ;;  %v3138_v18 = vld [vmem:[#allocation11 + $0x74] ss:$8 sps:$4 sm:$0xff]  }
 0x672   :  { %1335 = vmatpush1.bf16.msra.mxu0 %v2548_v39  ;;  %1366 = vmatprep.mubr.bf16.mxu0 %v3266_v34 }
 0x673   :  { %1336 = vmatprep.subr.bf16.mxu0 %v2552_v41 }
 0x676   :  { %1337 = vmatpush1.bf16.msra.mxu0 %v2557_v42 }
 0x677   :  { %1338 = vmatprep.subr.bf16.mxu0 %v2561_v43  ;;  %v3278_v43 = vld [vmem:[#allocation23_spill] sm:$0xff] }
 0x67a   :  { %1339 = vmatpush1.bf16.msra.mxu0 %v2564_v44  ;;  %v244_v44 = vadd.f32 %v3278_v43, %v2529_v30 }
 0x67b   :  { %1340 = vmatprep.subr.bf16.mxu0 %v2567_v45 }
 0x67e   :  { %1341 = vmatpush1.bf16.msra.mxu0 %v2570_v46 }
 0x67f   :  { %1342 = vmatprep.subr.bf16.mxu0 %v2576_v48 }
 0x682   :  { %1343 = vmatpush1.bf16.msra.mxu0 %v2578_v49 }
 0x683   :  { %1344 = vmatprep.subr.bf16.mxu0 %v2586_v52 }
 0x686   :  { %1345 = vmatpush1.bf16.msra.mxu0 %v2588_v54 }
 0x687   :  { %1346 = vmatprep.subr.bf16.mxu0 %v2598_v56 }
 0x68a   :  { %1347 = vmatpush1.bf16.msra.mxu0 %v2600_v57 }
 0x68b   :  { %1348 = vmatprep.subr.bf16.mxu0 %v3274_v6 }
 0x68e   :  { %1349 = vmatpush1.bf16.msra.mxu0 %v3275_v11  ;;  %v2097_v11 = vld [vmem:[#allocation9] sm:$0xff]  }
 0x68f   :  { %1956 = vmatprep.subr.bf16.mxu0 %v3267_v60 }
 0x723   :  { %v1227_v19 = vpop.f32.mrb[28].mxu1 }
 0x724   :  { %v1228_v20 = vadd.f32 %v1227_v19, %v3276_v14  ;;  %v1185_v21 = vpop.f32.mrb[32].mxu0  ;;  %v1229_v22 = vpop.f32.mrb[29].mxu1  ;;  %v3141_v19 = vld [vmem:[#allocation11 + $0x70] ss:$8 sps:$4 sm:$0xff]  }
 0x725   :  { %v1230_v23 = vadd.f32 %v1229_v22, %v2709_v5  ;;  %v1934_v25 = vpop.f32.mrb[33].mxu0  ;;  %v1231_v29 = vpop.f32.mrb[30].mxu1 }
 0x726   :  { %1237 = vst [vmem:[#allocation12 + $0x40] sm:$0xff] %v1228_v20  ;;  %v1188_v39 = vpop.f32.mrb[34].mxu0  ;;  %v1232_v41 = vpop.f32.mrb[31].mxu1 }
 0x727   :  { %1238 = vst [vmem:[#allocation12 + $0x48] sm:$0xff] %v1230_v23  ;;  %v1935_v42 = vpop.f32.mrb[35].mxu0 }
 0x744   :  { %v1280_v45 = vpop.f32.mrb[36].mxu0 }
 0x745   :  { %v1383_v46 = vadd.f32 %v1280_v45, %v244_v44  ;;  %v1282_v48 = vpop.f32.mrb[37].mxu0  ;;  %v2125_v44 = vld [vmem:[%s3238_s3] ss:$0 sm:$0xff]  ;;  %v3279_v45 = vld [vmem:[#allocation25_spill] sm:$0xff]  ;;  %s2303_s3 = smov [#allocation13]  }
 0x746   :  { %v1287_v49 = vadd.f32 %v1282_v48, %v1185_v21  ;;  %v1284_v52 = vpop.f32.mrb[38].mxu0 }
 0x747   :  { %v1285_v54 = vpop.f32.mrb[39].mxu0 }
 0x748   :  { %v1288_v56 = vadd.f32 %v2623_v62, %v1287_v49  ;;  %v2098_v62 = vld [vmem:[#allocation9 + $0x8] sm:$0xff]  }
 0x74a   :  { %2079 = vtanh.f32 %v1288_v56 }
 0x74b   :  { %2081 = vtanh.f32 %v1383_v46  ;;  %v247_v46 = vadd.f32 %v2125_v44, %v3279_v45 }
 0x754   :  { %v2080_v57 = vpop.eup %2079 }
 0x755   :  { %v1741_v9 = vpack.c.bf16 %v2080_v57, %v2080_v57  ;;  %v3037_v6 = vsel %vm1239_vm12, %v2080_v57, %v2946_v7  ;;  %v3123_v7 = vld [vmem:[#allocation11 + $0x40] ss:$8 sps:$4 sm:$0xff]  }
 0x756   :  { %v1291_v30 = vpack.c.bf16 %v3037_v6, %v3037_v6 }
 0x757   :  { %1742 = vmatmul.mubr.msk.bf16.vlgmr.msra.gmra.mrb[40].mxu0 %vm1740_vm13, %v1741_v9  ;;  %v3153_v9 = vld [vmem:[%s3241_s6] ss:$0 sm:$0xff]  ;;  %s1640_s6 = sshll.u32 %s2303_s3, 4  ;;  %s1641_s6 = int_to_ptr.vmem [resolvable:$true] %s1640_s6 }
 0x758   :  { %1953 = vmatmul.mubr.bf16.vlgmr.msra.gmra.mrb[32].mxu1 %v1291_v30  ;;  %1957 = vmatpush3.bf16.msra.mxu0 %v2097_v11  ;;  %s2237_s20 = scalar_lea.vmem %s1641_s6, 256  ;;  %p2242_p13 = scmp.lt.s32.totalorder %s1641_s6, %s1641_s6 }
 0x759   :  { %1388 = vmatpush1.bf16.msra.mxu1 %v2954_v13  ;;  %1419 = vmatprep.mubr.bf16.mxu1 %v3266_v34  ;;  %p2238_p12 = scmp.ne.s32.totalorder %s1641_s6, %s2237_s20  ;;  %p2243_p0 = scmp.lt.s32.totalorder %s2237_s20, %s2237_s20 }
 0x75a   :  { %1389 = vmatprep.subr.bf16.mxu1 %v2958_v15  ;;  %1958 = vmatprep.subr.bf16.mxu0 %v3267_v60 }
 0x75b   :  { %1972 = vmatprep.mubr.msk.bf16.mxu0 %vm2302_vm3, %v3267_v60  ;;  %p2244_p1 = por %p2243_p0, %p2242_p13 }
 0x75c   :  { %1959 = vmatpush3.bf16.msra.mxu0 %v2098_v62 }
 0x75d   :  { %1390 = vmatpush1.bf16.msra.mxu1 %v2965_v3  ;;  %1960 = vmatprep.subr.bf16.mxu0 %v3267_v60  ;;  %p2245_p2 = pnand %p2244_p1, %p2238_p12 }
 0x75e   :  { %1391 = vmatprep.subr.bf16.mxu1 %v2969_v24 }
 0x760   :  { %1961 = vmatpush3.bf16.msra.mxu0 %v2099_v40 }
 0x761   :  { %1392 = vmatpush1.bf16.msra.mxu1 %v2973_v8  ;;  %1962 = vmatprep.subr.bf16.mxu0 %v3267_v60 }
 0x762   :  { %1393 = vmatprep.subr.bf16.mxu1 %v2977_v4 }
 0x764   :  { %1963 = vmatpush3.bf16.msra.mxu0 %v2100_v33 }
 0x765   :  { %1394 = vmatpush1.bf16.msra.mxu1 %v2981_v27  ;;  %1964 = vmatprep.subr.bf16.mxu0 %v3267_v60 }
 0x766   :  { %1395 = vmatprep.subr.bf16.mxu1 %v3058_v2 }
 0x768   :  { %1965 = vmatpush3.bf16.msra.mxu0 %v2574_v47  ;;  %v2082_v47 = vpop.eup %2081 }
 0x769   :  { %1396 = vmatpush1.bf16.msra.mxu1 %v3062_v12  ;;  %1966 = vmatprep.subr.bf16.mxu0 %v3267_v60  ;;  %v3089_v61 = vsel %vm1380_vm14, %v2082_v47, %v3002_v16  ;;  %v3132_v16 = vld [vmem:[#allocation11 + $0x64] ss:$8 sps:$4 sm:$0xff]  }
 0x76a   :  { %1397 = vmatprep.subr.bf16.mxu1 %v3066_v31 }
 0x76c   :  { %1967 = vmatpush3.bf16.msra.mxu0 %v2584_v51  ;;  %v3082_v51 = vld [vmem:[#allocation8 + $0x74] ss:$8 sps:$4 sm:$0xff]  }
 0x76d   :  { %1398 = vmatpush1.bf16.msra.mxu1 %v3070_v32  ;;  %1968 = vmatprep.subr.bf16.mxu0 %v3267_v60 }
 0x76e   :  { %1399 = vmatprep.subr.bf16.mxu1 %v3074_v50 }
 0x770   :  { %1969 = vmatpush3.bf16.msra.mxu0 %v2596_v55  ;;  %v3092_v55 = vld [vmem:[#allocation8 + $0x70] ss:$8 sps:$4 sm:$0xff]  }
 0x771   :  { %1400 = vmatpush1.bf16.msra.mxu1 %v3078_v53  ;;  %1970 = vmatprep.subr.bf16.mxu0 %v3267_v60  ;;  %v1386_v60 = vpack.c.bf16 %v3089_v61, %v3089_v61 }
 0x772   :  { %1401 = vmatprep.subr.bf16.mxu1 %v3082_v51 }
 0x774   :  { %1971 = vmatpush3.bf16.msra.mxu0 %v2606_v58  ;;  %v3105_v58 = vld [vmem:[#allocation11 + $0x10] ss:$8 sps:$4 sm:$0xff]  }
 0x775   :  { %1402 = vmatpush1.bf16.msra.mxu1 %v3092_v55  ;;  %1528 = vmatprep.subr.bf16.mxu0 %v3006_v17  ;;  %v3135_v17 = vld [vmem:[#allocation11 + $0x60] ss:$8 sps:$4 sm:$0xff]  }
 0x776   :  { %1475 = vmatprep.subr.bf16.mxu1 %v2109_v1 }
 0x778   :  { %1420 = vmatmul.mubr.bf16.vlgmr.msra.gmra.mrb[36].mxu1 %v1386_v60 }
 0x779   :  { %1476 = vmatpush1.bf16.msra.mxu1 %v3098_v63  ;;  %1507 = vmatprep.mubr.bf16.mxu1 %v3266_v34 }
 0x77a   :  { %1477 = vmatprep.subr.bf16.mxu1 %v3102_v59 }
 0x77d   :  { %1478 = vmatpush1.bf16.msra.mxu1 %v3105_v58 }
 0x77e   :  { %1479 = vmatprep.subr.bf16.mxu1 %v3108_v0 }
 0x781   :  { %1480 = vmatpush1.bf16.msra.mxu1 %v3111_v35 }
 0x782   :  { %1481 = vmatprep.subr.bf16.mxu1 %v3114_v37 }
 0x785   :  { %1482 = vmatpush1.bf16.msra.mxu1 %v3117_v38 }
 0x786   :  { %1483 = vmatprep.subr.bf16.mxu1 %v3120_v26 }
 0x789   :  { %1484 = vmatpush1.bf16.msra.mxu1 %v3123_v7 }
 0x78a   :  { %1485 = vmatprep.subr.bf16.mxu1 %v3126_v10 }
 0x78d   :  { %1486 = vmatpush1.bf16.msra.mxu1 %v3129_v28 }
 0x78e   :  { %1487 = vmatprep.subr.bf16.mxu1 %v3132_v16 }
 0x791   :  { %1488 = vmatpush1.bf16.msra.mxu1 %v3135_v17 }
 0x792   :  { %1489 = vmatprep.subr.bf16.mxu1 %v3138_v18 }
 0x795   :  { %1490 = vmatpush1.bf16.msra.mxu1 %v3141_v19 }
 0x796   :  { %1574 = vmatprep.subr.bf16.mxu1 %v2109_v1 }
 0x82a   :  { %v1368_v20 = vpop.f32.mrb[40].mxu0 }
 0x82b   :  { %v1369_v21 = vadd.f32 %v1368_v20, %v3276_v14  ;;  %v1326_v22 = vpop.f32.mrb[32].mxu1  ;;  %v1370_v23 = vpop.f32.mrb[41].mxu0 }
 0x82c   :  { %v1371_v25 = vadd.f32 %v1370_v23, %v2709_v5  ;;  %v1954_v29 = vpop.f32.mrb[33].mxu1  ;;  %v1372_v39 = vpop.f32.mrb[42].mxu0 }
 0x82d   :  { %1378 = vst [vmem:[#allocation12 + $0x50] sm:$0xff] %v1369_v21  ;;  %v1329_v41 = vpop.f32.mrb[34].mxu1  ;;  %v1373_v42 = vpop.f32.mrb[43].mxu0 }
 0x82e   :  { %1379 = vst [vmem:[#allocation12 + $0x58] sm:$0xff] %v1371_v25  ;;  %v1955_v43 = vpop.f32.mrb[35].mxu1 }
 0x84b   :  { %v1421_v48 = vpop.f32.mrb[36].mxu1 }
 0x84c   :  { %v1524_v49 = vadd.f32 %v1421_v48, %v247_v46  ;;  %v1423_v52 = vpop.f32.mrb[37].mxu1 }
 0x84d   :  { %v1428_v54 = vadd.f32 %v1423_v52, %v1326_v22  ;;  %v1425_v56 = vpop.f32.mrb[38].mxu1 }
 0x84e   :  { %2083 = vtanh.f32 %v1524_v49  ;;  %v1426_v57 = vpop.f32.mrb[39].mxu1 }
 0x84f   :  { %v1429_v30 = vadd.f32 %v3153_v9, %v1428_v54 }
 0x851   :  { %2085 = vtanh.f32 %v1429_v30 }
 0x858   :  { %v2084_v11 = vpop.eup %2083 }
 0x859   :  { %v1526_v62 = vsel %vm1521_vm15, %v2084_v11, %v3089_v61 }
 0x85a   :  { %1620 = vst [vmem:[#allocation13] sm:$0xff] %v1526_v62 }
 0x85b   :  { %v2086_v40 = vpop.eup %2085 }
 0x85c   :  { %v1744_v33 = vpack.c.bf16 %v2086_v40, %v2086_v40  ;;  %v1431_v47 = vsel %vm1380_vm14, %v2086_v40, %v3037_v6 }
 0x85d   :  { %v1432_v60 = vpack.c.bf16 %v1431_v47, %v1431_v47 }
 0x85e   :  { %1745 = vmatmul.mubr.msk.bf16.vlgmr.msra.gmra.mrb[40].mxu1 %vm1743_vm0, %v1744_v33 }
 0x85f   :  { %1973 = vmatmul.mubr.bf16.vlgmr.msra.gmra.mrb[44].mxu0 %v1432_v60  ;;  %1575 = vmatpush1.bf16.msra.mxu1 %v3098_v63 }
 0x860   :  { %1529 = vmatpush1.bf16.msra.mxu0 %v2954_v13  ;;  %1560 = vmatprep.mubr.bf16.mxu0 %v3266_v34 }
 0x861   :  { %1530 = vmatprep.subr.bf16.mxu0 %v2958_v15  ;;  %1576 = vmatprep.subr.bf16.mxu1 %v3102_v59 }
 0x862   :  { %1606 = vmatprep.mubr.bf16.mxu1 %v3266_v34  ;;  %v1527_v34 = vpack.c.bf16 %v1526_v62, %v1526_v62 }
 0x863   :  { %1577 = vmatpush1.bf16.msra.mxu1 %v3105_v58 }
 0x864   :  { %1531 = vmatpush1.bf16.msra.mxu0 %v2965_v3  ;;  %1578 = vmatprep.subr.bf16.mxu1 %v3108_v0 }
 0x865   :  { %1532 = vmatprep.subr.bf16.mxu0 %v2969_v24 }
 0x867   :  { %1579 = vmatpush1.bf16.msra.mxu1 %v3111_v35 }
 0x868   :  { %1533 = vmatpush1.bf16.msra.mxu0 %v2973_v8  ;;  %1580 = vmatprep.subr.bf16.mxu1 %v3114_v37 }
 0x869   :  { %1534 = vmatprep.subr.bf16.mxu0 %v2977_v4 }
 0x86b   :  { %1581 = vmatpush1.bf16.msra.mxu1 %v3117_v38 }
 0x86c   :  { %1535 = vmatpush1.bf16.msra.mxu0 %v2981_v27  ;;  %1582 = vmatprep.subr.bf16.mxu1 %v3120_v26 }
 0x86d   :  { %1536 = vmatprep.subr.bf16.mxu0 %v3058_v2 }
 0x86f   :  { %1583 = vmatpush1.bf16.msra.mxu1 %v3123_v7 }
 0x870   :  { %1537 = vmatpush1.bf16.msra.mxu0 %v3062_v12  ;;  %1584 = vmatprep.subr.bf16.mxu1 %v3126_v10 }
 0x871   :  { %1538 = vmatprep.subr.bf16.mxu0 %v3066_v31 }
 0x873   :  { %1585 = vmatpush1.bf16.msra.mxu1 %v3129_v28 }
 0x874   :  { %1539 = vmatpush1.bf16.msra.mxu0 %v3070_v32  ;;  %1586 = vmatprep.subr.bf16.mxu1 %v3132_v16 }
 0x875   :  { %1540 = vmatprep.subr.bf16.mxu0 %v3074_v50 }
 0x877   :  { %1587 = vmatpush1.bf16.msra.mxu1 %v3135_v17 }
 0x878   :  { %1541 = vmatpush1.bf16.msra.mxu0 %v3078_v53  ;;  %1588 = vmatprep.subr.bf16.mxu1 %v3138_v18 }
 0x879   :  { %1542 = vmatprep.subr.bf16.mxu0 %v3082_v51 }
 0x87b   :  { %1589 = vmatpush1.bf16.msra.mxu1 %v3141_v19 }
 0x87c   :  { %1543 = vmatpush1.bf16.msra.mxu0 %v3092_v55 }
 0x87f   :  { %1561 = vmatmul.mubr.bf16.vlgmr.msra.gmra.mrb[48].mxu0 %v1527_v34 }
 0x931   :  { %v1509_v13 = vpop.f32.mrb[40].mxu1 }
 0x932   :  { %v1510_v15 = vadd.f32 %v1509_v13, %v3276_v14  ;;  %v1467_v3 = vpop.f32.mrb[44].mxu0  ;;  %v1511_v24 = vpop.f32.mrb[41].mxu1 }
 0x933   :  { %v1512_v8 = vadd.f32 %v1511_v24, %v2709_v5  ;;  %v1974_v4 = vpop.f32.mrb[45].mxu0  ;;  %v1513_v27 = vpop.f32.mrb[42].mxu1 }
 0x934   :  { %1519 = vst [vmem:[#allocation12 + $0x60] sm:$0xff] %v1510_v15  ;;  %v1470_v6 = vpop.f32.mrb[46].mxu0  ;;  %v1514_v2 = vpop.f32.mrb[43].mxu1 }
 0x935   :  { %1520 = vst [vmem:[#allocation12 + $0x68] sm:$0xff] %v1512_v8  ;;  %v1975_v12 = vpop.f32.mrb[47].mxu0 }
 0x952   :  { %v1562_v31 = vpop.f32.mrb[48].mxu0 }
 0x953   :  { %v1563_v32 = vpop.f32.mrb[49].mxu0 }
 0x954   :  { %v1568_v50 = vadd.f32 %v1563_v32, %v1467_v3  ;;  %v1565_v53 = vpop.f32.mrb[50].mxu0 }
 0x955   :  { %v1566_v51 = vpop.f32.mrb[51].mxu0 }
 0x956   :  { %v1569_v61 = vadd.f32 %v3153_v9, %v1568_v50 }
 0x958   :  { %2087 = vtanh.f32 %v1569_v61 }
 0x962   :  { %v2088_v55 = vpop.eup %2087 }
 0x963   :  { %v1747_v1 = vpack.c.bf16 %v2088_v55, %v2088_v55  ;;  %v1571_v63 = vsel %vm1521_vm15, %v2088_v55, %v1431_v47 }
 0x964   :  { %1622 = vst [vmem:[#allocation13 + $0x8] sm:$0xff] %v1571_v63 }
 0x965   :  { %1748 = vmatmul.mubr.msk.bf16.vlgmr.msra.gmra.mrb[44].mxu1 %vm1746_vm1, %v1747_v1 }
 0x966   :  { %2248 = shalt.err (!%p2245_p2)
}
 0x967   :  { %s2249_s27 = scalar_lea.hbm %s3245_s10, 256 }
 0x968   :  { %p2250_p3 = scmp.ne.s32.totalorder %s3245_s10, %s2249_s27  ;;  %p2253_p4 = scmp.lt.u32.totalorder %s2249_s27, %s3245_s10 }
 0x96a   :  { %p2255_p5 = pnand %p2253_p4, %p2250_p3 }
 0x96c   :  { %2258 = shalt.err (!%p2255_p5)
}
 0x96d   :  { %1646 = dma.vmem_to_hbm [thread:$0]  %s1641_s6, 256, %s3245_s10, [#allocation14], %s2297_s0, %s2297_s0, %s2298_s25  }
 0x96e   :  { %s2304_s12 = smov [#allocation12]  }
 0x96f   :  { %s1628_s4 = sshll.u32 %s2304_s12, 4  ;;  %s1629_s4 = int_to_ptr.vmem [resolvable:$true] %s1628_s4 }
 0x970   :  { %s2259_s22 = scalar_lea.vmem %s1629_s4, 2048  ;;  %p2264_p7 = scmp.lt.s32.totalorder %s1629_s4, %s1629_s4 }
 0x971   :  { %p2260_p6 = scmp.ne.s32.totalorder %s1629_s4, %s2259_s22  ;;  %p2265_p8 = scmp.lt.s32.totalorder %s2259_s22, %s2259_s22 }
 0x973   :  { %p2266_p9 = por %p2265_p8, %p2264_p7 }
 0x975   :  { %p2267_p10 = pnand %p2266_p9, %p2260_p6 }
 0xa38   :  { %v1608_v36 = vpop.f32.mrb[44].mxu1 }
 0xa39   :  { %v1609_v59 = vadd.f32 %v1608_v36, %v3276_v14  ;;  %v1610_v58 = vpop.f32.mrb[45].mxu1 }
 0xa3a   :  { %v1611_v0 = vadd.f32 %v1610_v58, %v2709_v5  ;;  %v1612_v35 = vpop.f32.mrb[46].mxu1 }
 0xa3b   :  { %1618 = vst [vmem:[#allocation12 + $0x70] sm:$0xff] %v1609_v59  ;;  %v1613_v37 = vpop.f32.mrb[47].mxu1 }
 0xa3c   :  { %1619 = vst [vmem:[#allocation12 + $0x78] sm:$0xff] %v1611_v0 }
 0xa3d   :  { %2270 = shalt.err (!%p2267_p10)
}
 0xa3e   :  { %s2271_s25 = scalar_lea.hbm %s3244_s9, 2048 }
 0xa3f   :  { %p2272_p11 = scmp.ne.s32.totalorder %s3244_s9, %s2271_s25  ;;  %p2275_p12 = scmp.lt.u32.totalorder %s2271_s25, %s3244_s9 }
 0xa41   :  { %p2277_p13 = pnand %p2275_p12, %p2272_p11 }
 0xa43   :  { %2280 = shalt.err (!%p2277_p13)
}
 0xa44   :  { %s2305_s17 = smov 256   ;;  %s2306_s18 = smov 16  }
 0xa45   :  { %1634 = dma.vmem_to_hbm [thread:$0]  %s1629_s4, 2048, %s3244_s9, [#allocation5], %s2305_s17, %s2305_s17, %s2306_s18  }
 0xa46   :  { %2287 = dma.done.wait [#allocation5], 2048  }
 0xa47   :  { %2288 = vsyncadd [#allocation5], 4294965248 }
 0xa48   :  { %2289 = dma.done.wait [#allocation14], 256  }
 0xa49   :  { %2290 = vsyncadd [#allocation14], 4294967040 }
 0xa4a   :  { %1653 = vsyncpa [#allocation4], 1 }
 0xa4b   :  { %1654 = vsyncpa [#allocation7], 1 }
 0xa4c   :  { %1655 = vsyncpa [#allocation10], 1 }
 0xa4d   :  { %1656 = vsyncpa [#allocation5], 1 }
 0xa4e   :  { %1657 = vsyncpa [#allocation14], 1 }

</bundles_post_ra>
